<compile_context>
chip_gen: v5e
topology: v5e:2x2
jax: 0.10.0
libtpu: 0.0.40
codegen_flags: <defaults>
</compile_context>

<pallas_src>
import functools

import jax
import jax.numpy as jnp
from jax.experimental import pallas as pl
from jax.experimental.pallas import tpu as pltpu


# ----------------------------- Pallas kernel ------------------------------ #
def _lstm_gcn_kernel(pre0_ref,                    # (T, N_blk, 4H)  layer-0 input gates (bias folded)
                     wrec_ref,                    # (2H, 8H) fused recurrent weights [[whh0, wih1],[0, whh1]]
                     b1_ref,                      # (1, 4H)  layer-1 combined bias
                     wc1_ref, bc1_ref,            # chebconv1 (K=1) == per-node linear
                     wc2_ref, bc2_ref,            # chebconv4 (K=1)
                     wl1_ref, bl1_ref,            # lin1
                     wl2_ref, bl2_ref,            # lin2 (zero-padded to 128 lanes)
                     out_ref):                    # (N_blk, 128)
    T, N, G = pre0_ref.shape                      # G = 4H
    H = G // 4

    # ---- hoisted loads: fused recurrent weight lives in vregs across steps ----
    w_rec = wrec_ref[...]                         # (2H, 8H)
    b1 = b1_ref[...]                              # (1, 4H)

    # Hoisted lane mask / scale for the "g" (tanh) gate columns (order i,f,g,o).
    lane = jax.lax.broadcasted_iota(jnp.int32, (N, G), 1)
    g_cols = (lane >= 2 * H) & (lane < 3 * H)
    gscale = jnp.where(g_cols, 1.0, 0.5)          # sigmoid(x) = 0.5*tanh(x/2) + 0.5

    def gate_update(gates, c):
        """One LSTM cell update from pre-activation gates (N, 4H); single tanh EUP op."""
        tg = jnp.tanh(gates * gscale)
        act = jnp.where(g_cols, tg, 0.5 * tg + 0.5)
        i_g = act[:, 0 * H:1 * H]
        f_g = act[:, 1 * H:2 * H]
        g_g = act[:, 2 * H:3 * H]
        o_g = act[:, 3 * H:4 * H]
        c_new = f_g * c + i_g * g_g
        h_new = o_g * jnp.tanh(c_new)
        return h_new, c_new

    # ---- Prologue: layer-0 step 0 (zero initial state -> no recurrent matmul) ----
    c0 = jnp.zeros((N, H), jnp.float32)
    h0, c0 = gate_update(pre0_ref[0], c0)         # h0 at time 0
    h1 = jnp.zeros((N, H), jnp.float32)           # layer-1 state at "time -1"
    c1 = jnp.zeros((N, H), jnp.float32)

    # ---- Pipelined steady state: layer-0 step t + layer-1 step t-1 in one dot ----
    for t in range(1, T):                         # T static -> fully unrolled
        fused_in = jnp.concatenate([h0, h1], axis=1)              # (N, 2H)
        fused = jnp.dot(fused_in, w_rec,
                        preferred_element_type=jnp.float32)        # (N, 8H)
        gates0 = pre0_ref[t] + fused[:, :G]                        # layer-0 @ time t
        gates1 = fused[:, G:] + b1                                 # layer-1 @ time t-1
        h0, c0 = gate_update(gates0, c0)
        h1, c1 = gate_update(gates1, c1)

    # ---- Epilogue: layer-1 step T-1 (consumes layer-0's final h0) ----
    fused_in = jnp.concatenate([h0, h1], axis=1)                   # (N, 2H)
    gates1 = jnp.dot(fused_in, w_rec[:, G:],
                     preferred_element_type=jnp.float32) + b1
    h1, c1 = gate_update(gates1, c1)                               # final hidden (N, H)

    # ---- SpatialEncoder: ChebConv(K=1) -> ReLU -> ChebConv(K=1) ----
    s = jnp.maximum(
        jnp.dot(h1, wc1_ref[...], preferred_element_type=jnp.float32)
        + bc1_ref[...], 0.0)
    s = (jnp.dot(s, wc2_ref[...], preferred_element_type=jnp.float32)
         + bc2_ref[...])
    # ---- Head: lin1 -> ReLU -> (dropout: identity in eval) -> lin2 (padded) ----
    s = jnp.maximum(
        jnp.dot(s, wl1_ref[...], preferred_element_type=jnp.float32)
        + bl1_ref[...], 0.0)
    out_ref[...] = (jnp.dot(s, wl2_ref[...], preferred_element_type=jnp.float32)
                    + bl2_ref[...])


# ------------------------------- wrapper ----------------------------------- #
@functools.partial(jax.jit, static_argnames=("forecast_horizon", "node_block"))
def lstm_gcn_forward(x, params, forecast_horizon, node_block=None):
    """x: (N, T, D_in) float32 (graph nodes act as the LSTM batch)."""
    N, T, _ = x.shape
    H = params["whh0_t"].shape[0]

    # Default: the whole graph in one grid step (grid=(1,)).  Only block nodes
    # if VMEM forces it; each block should still be >=128 rows to fill the MXU.
    if node_block is None:
        node_block = N
    assert N % node_block == 0, "node_block must divide N"
    assert node_block % 8 == 0 or node_block == N, "node_block must be a multiple of 8"
    grid = (N // node_block,)

    # Hoist the layer-0 input projection into XLA: one GEMM over all timesteps,
    # producing a lane-dense time-major (T, N, 4H) pre-gate block (bias folded).
    pre0 = jnp.einsum("ntd,dg->tng", x, params["wih0_t"]) + params["b0"]
    pre0 = pre0.astype(jnp.float32)

    # Fused recurrent weight driving both layers per step:
    #   [ whh0   wih1 ]            gates0 = h0 @ whh0
    #   [  0     whh1 ]   so that  gates1 = h0 @ wih1 + h1 @ whh1
    w_rec = jnp.concatenate(
        [jnp.concatenate([params["whh0_t"], params["wih1_t"]], axis=1),
         jnp.concatenate([jnp.zeros((H, 4 * H), jnp.float32),
                          params["whh1_t"]], axis=1)],
        axis=0)                                                     # (2H, 8H)

    # Lane-dense output: zero-pad lin2 to a multiple of 128 columns so the final
    # matmul + store are unmasked full-lane writes; slice back after the call.
    out_pad = max(128, -(-forecast_horizon // 128) * 128)
    hf = params["wl2"].shape[0]
    wl2 = jnp.zeros((hf, out_pad), jnp.float32).at[:, :forecast_horizon].set(params["wl2"])
    bl2 = jnp.zeros((1, out_pad), jnp.float32).at[:, :forecast_horizon].set(params["bl2"])

    args = (
        pre0, w_rec, params["b1"],
        params["wc1"], params["bc1"],
        params["wc2"], params["bc2"],
        params["wl1"], params["bl1"],
        wl2, bl2,
    )

    # Weights/biases: whole-array VMEM blocks, same block at every grid step.
    def full(a):
        return pl.BlockSpec(a.shape, lambda i, _nd=a.ndim: (0,) * _nd)

    in_specs = [pl.BlockSpec((T, node_block, 4 * H), lambda i: (0, i, 0))]
    in_specs += [full(a) for a in args[1:]]
    out_specs = pl.BlockSpec((node_block, out_pad), lambda i: (i, 0))

    out = pl.pallas_call(
        _lstm_gcn_kernel,
        out_shape=jax.ShapeDtypeStruct((N, out_pad), jnp.float32),
        grid=grid,
        in_specs=in_specs,
        out_specs=out_specs,
        compiler_params=pltpu.CompilerParams(
            # Nodes are independent; with the default node_block=N this is a
            # single grid step, so no serialization on 1-TC chips.
            dimension_semantics=("parallel",)),
    )(*args)
    return out[:, :forecast_horizon]


# ------------------------- pure-JAX reference ------------------------------ #
def _reference(x, params):
    N, T, _ = x.shape
    H = params["whh0_t"].shape[0]

    def cell(x_t, h, c, wih_t, whh_t, b):
        g = x_t @ wih_t + h @ whh_t + b
        i, f, gg, o = (jax.nn.sigmoid(g[:, :H]), jax.nn.sigmoid(g[:, H:2 * H]),
                       jnp.tanh(g[:, 2 * H:3 * H]), jax.nn.sigmoid(g[:, 3 * H:]))
        c = f * c + i * gg
        return o * jnp.tanh(c), c

    h0 = c0 = h1 = c1 = jnp.zeros((N, H), jnp.float32)
    for t in range(T):
        h0, c0 = cell(x[:, t, :], h0, c0, params["wih0_t"], params["whh0_t"], params["b0"])
        h1, c1 = cell(h0, h1, c1, params["wih1_t"], params["whh1_t"], params["b1"])
    s = jnp.maximum(h1 @ params["wc1"] + params["bc1"], 0.0)
    s = s @ params["wc2"] + params["bc2"]
    s = jnp.maximum(s @ params["wl1"] + params["bl1"], 0.0)
    return s @ params["wl2"] + params["bl2"]


# --------------------------------- main ------------------------------------ #
if __name__ == "__main__":
    # Small shapes consistent with the module.
    N = 16                # graph nodes == LSTM batch
    T = 8                 # sequence length
    input_size = 8
    hidden_size = 32
    num_layers = 2        # kernel hardcodes 2 LSTM layers
    in_channels = hidden_size
    hidden_channels = 16
    out_channels = 16
    hidden_features = 32
    forecast_horizon = 4
    k = 1                 # ChebConv order; kernel only implements K=1
    assert k == 1, "Pallas LSTM-GCN kernel only supports ChebConv K=1"

    key = jax.random.PRNGKey(0)
    keys = jax.random.split(key, 20)
    u = lambda kk, shape, s: jax.random.uniform(kk, shape, jnp.float32, -s, s)

    sH = 1.0 / jnp.sqrt(hidden_size)
    params = {
        # LSTM layer 0: W_ih (4H, D_in) / W_hh (4H, H) stored transposed.
        "wih0_t": u(keys[0], (input_size, 4 * hidden_size), sH),
        "whh0_t": u(keys[1], (hidden_size, 4 * hidden_size), sH),
        "b0":     u(keys[2], (1, 4 * hidden_size), sH),            # b_ih + b_hh combined
        # LSTM layer 1
        "wih1_t": u(keys[3], (hidden_size, 4 * hidden_size), sH),
        "whh1_t": u(keys[4], (hidden_size, 4 * hidden_size), sH),
        "b1":     u(keys[5], (1, 4 * hidden_size), sH),
        # ChebConv1 (K=1): (in_channels -> hidden_channels)
        "wc1": u(keys[6], (in_channels, hidden_channels), 1.0 / jnp.sqrt(in_channels)),
        "bc1": u(keys[7], (1, hidden_channels), 0.1),
        # ChebConv4 (K=1): (hidden_channels -> out_channels)
        "wc2": u(keys[8], (hidden_channels, out_channels), 1.0 / jnp.sqrt(hidden_channels)),
        "bc2": u(keys[9], (1, out_channels), 0.1),
        # lin1 / lin2 (stored as (in, out))
        "wl1": u(keys[10], (out_channels, hidden_features), 1.0 / jnp.sqrt(out_channels)),
        "bl1": u(keys[11], (1, hidden_features), 1.0 / jnp.sqrt(out_channels)),
        "wl2": u(keys[12], (hidden_features, forecast_horizon), 1.0 / jnp.sqrt(hidden_features)),
        "bl2": u(keys[13], (1, forecast_horizon), 1.0 / jnp.sqrt(hidden_features)),
    }

    x = jax.random.normal(keys[14], (N, T, input_size), jnp.float32)
    # edge_index (ring graph) — unused by ChebConv with K=1, kept for interface fidelity.
    edge_index = jnp.stack([jnp.arange(N), (jnp.arange(N) + 1) % N]).astype(jnp.int32)

    out = lstm_gcn_forward(x, params, forecast_horizon)   # default node_block=N -> grid=(1,)
    out = jax.block_until_ready(out)

    ref = _reference(x, params)
    assert out.shape == (N, forecast_horizon)
    assert jnp.allclose(out, ref, atol=1e-4, rtol=1e-4), "Pallas kernel mismatch vs reference"

    print("KERNEL_OK")
</pallas_src>

<mosaic_0001>
module attributes {stable_mosaic.version = 11 : i64} {
  func.func @_lstm_gcn_kernel(%arg0: i32, %arg1: memref<8x16x128xf32, #tpu.memory_space<vmem>>, %arg2: memref<64x256xf32, #tpu.memory_space<vmem>>, %arg3: memref<1x128xf32, #tpu.memory_space<vmem>>, %arg4: memref<32x16xf32, #tpu.memory_space<vmem>>, %arg5: memref<1x16xf32, #tpu.memory_space<vmem>>, %arg6: memref<16x16xf32, #tpu.memory_space<vmem>>, %arg7: memref<1x16xf32, #tpu.memory_space<vmem>>, %arg8: memref<16x32xf32, #tpu.memory_space<vmem>>, %arg9: memref<1x32xf32, #tpu.memory_space<vmem>>, %arg10: memref<32x128xf32, #tpu.memory_space<vmem>>, %arg11: memref<1x128xf32, #tpu.memory_space<vmem>>, %arg12: memref<16x128xf32, #tpu.memory_space<vmem>>) attributes {dimension_semantics = [#tpu.dimension_semantics<parallel>], iteration_bounds = array<i64: 1>, scalar_prefetch = 0 : i64, scratch_operands = 0 : i64, tpu.core_type = #tpu.core_type<tc>, window_params = [{transform_indices = @transform_0, window_bounds = array<i64: 8, 16, 128>}, {pipeline_mode = #tpu.pipeline_mode<synchronous>, transform_indices = @transform_1, window_bounds = array<i64: 64, 256>}, {pipeline_mode = #tpu.pipeline_mode<synchronous>, transform_indices = @transform_2, window_bounds = array<i64: 1, 128>}, {pipeline_mode = #tpu.pipeline_mode<synchronous>, transform_indices = @transform_3, window_bounds = array<i64: 32, 16>}, {pipeline_mode = #tpu.pipeline_mode<synchronous>, transform_indices = @transform_4, window_bounds = array<i64: 1, 16>}, {pipeline_mode = #tpu.pipeline_mode<synchronous>, transform_indices = @transform_5, window_bounds = array<i64: 16, 16>}, {pipeline_mode = #tpu.pipeline_mode<synchronous>, transform_indices = @transform_6, window_bounds = array<i64: 1, 16>}, {pipeline_mode = #tpu.pipeline_mode<synchronous>, transform_indices = @transform_7, window_bounds = array<i64: 16, 32>}, {pipeline_mode = #tpu.pipeline_mode<synchronous>, transform_indices = @transform_8, window_bounds = array<i64: 1, 32>}, {pipeline_mode = #tpu.pipeline_mode<synchronous>, transform_indices = @transform_9, window_bounds = array<i64: 32, 128>}, {pipeline_mode = #tpu.pipeline_mode<synchronous>, transform_indices = @transform_10, window_bounds = array<i64: 1, 128>}, {transform_indices = @transform_11, window_bounds = array<i64: 16, 128>}]} {
    %c0 = arith.constant 0 : index
    %c0_0 = arith.constant 0 : index
    %0 = vector.load %arg2[%c0, %c0_0] : memref<64x256xf32, #tpu.memory_space<vmem>>, vector<64x256xf32>
    %c0_1 = arith.constant 0 : index
    %c0_2 = arith.constant 0 : index
    %1 = vector.load %arg3[%c0_1, %c0_2] : memref<1x128xf32, #tpu.memory_space<vmem>>, vector<1x128xf32>
    %2 = tpu.iota {dimensions = array<i32: 1>} : vector<16x128xi32>
    %c64_i32 = arith.constant 64 : i32
    %3 = vector.broadcast %c64_i32 : i32 to vector<16x128xi32>
    %4 = arith.cmpi sge, %2, %3 : vector<16x128xi32>
    %c96_i32 = arith.constant 96 : i32
    %5 = vector.broadcast %c96_i32 : i32 to vector<16x128xi32>
    %6 = arith.cmpi slt, %2, %5 : vector<16x128xi32>
    %7 = arith.andi %4, %6 : vector<16x128xi1>
    %cst = arith.constant 1.000000e+00 : f32
    %cst_3 = arith.constant 5.000000e-01 : f32
    %8 = vector.broadcast %cst : f32 to vector<16x128xf32>
    %9 = vector.broadcast %cst_3 : f32 to vector<16x128xf32>
    %10 = arith.select %7, %8, %9 : vector<16x128xi1>, vector<16x128xf32>
    %cst_4 = arith.constant 0.000000e+00 : f32
    %11 = vector.broadcast %cst_4 : f32 to vector<16x32xf32>
    %c0_5 = arith.constant 0 : index
    %c0_6 = arith.constant 0 : index
    %c0_7 = arith.constant 0 : index
    %12 = vector.load %arg1[%c0_5, %c0_6, %c0_7] : memref<8x16x128xf32, #tpu.memory_space<vmem>>, vector<1x16x128xf32>
    %13 = vector.shape_cast %12 : vector<1x16x128xf32> to vector<16x128xf32>
    %14 = arith.mulf %13, %10 : vector<16x128xf32>
    %15 = math.tanh %14 : vector<16x128xf32>
    %cst_8 = arith.constant 5.000000e-01 : f32
    %16 = vector.broadcast %cst_8 : f32 to vector<16x128xf32>
    %17 = arith.mulf %16, %15 : vector<16x128xf32>
    %cst_9 = arith.constant 5.000000e-01 : f32
    %18 = vector.broadcast %cst_9 : f32 to vector<16x128xf32>
    %19 = arith.addf %17, %18 : vector<16x128xf32>
    %20 = arith.select %7, %15, %19 : vector<16x128xi1>, vector<16x128xf32>
    %21 = vector.extract_strided_slice %20 {offsets = [0, 0], sizes = [16, 32], strides = [1, 1]} : vector<16x128xf32> to vector<16x32xf32>
    %22 = vector.extract_strided_slice %20 {offsets = [0, 32], sizes = [16, 32], strides = [1, 1]} : vector<16x128xf32> to vector<16x32xf32>
    %23 = vector.extract_strided_slice %20 {offsets = [0, 64], sizes = [16, 32], strides = [1, 1]} : vector<16x128xf32> to vector<16x32xf32>
    %24 = vector.extract_strided_slice %20 {offsets = [0, 96], sizes = [16, 32], strides = [1, 1]} : vector<16x128xf32> to vector<16x32xf32>
    %25 = arith.mulf %22, %11 : vector<16x32xf32>
    %26 = arith.mulf %21, %23 : vector<16x32xf32>
    %27 = arith.addf %25, %26 : vector<16x32xf32>
    %28 = math.tanh %27 : vector<16x32xf32>
    %29 = arith.mulf %24, %28 : vector<16x32xf32>
    %cst_10 = arith.constant 0.000000e+00 : f32
    %30 = vector.broadcast %cst_10 : f32 to vector<16x32xf32>
    %cst_11 = arith.constant 0.000000e+00 : f32
    %31 = vector.broadcast %cst_11 : f32 to vector<16x32xf32>
    %32 = tpu.concatenate %29, %30 in 1 : vector<16x32xf32>, vector<16x32xf32> -> vector<16x64xf32>
    %cst_12 = arith.constant dense<0.000000e+00> : vector<16x256xf32>
    %33 = tpu.matmul %32, %0, %cst_12 {dimension_numbers = #tpu.dot_dimension_numbers<[1], [0], [0], [1], [0, 0, 1, 1], [], []>} : vector<16x64xf32>, vector<64x256xf32>, vector<16x256xf32> -> vector<16x256xf32>
    %c1 = arith.constant 1 : index
    %c0_13 = arith.constant 0 : index
    %c0_14 = arith.constant 0 : index
    %34 = vector.load %arg1[%c1, %c0_13, %c0_14] : memref<8x16x128xf32, #tpu.memory_space<vmem>>, vector<1x16x128xf32>
    %35 = vector.shape_cast %34 : vector<1x16x128xf32> to vector<16x128xf32>
    %36 = vector.extract_strided_slice %33 {offsets = [0, 0], sizes = [16, 128], strides = [1, 1]} : vector<16x256xf32> to vector<16x128xf32>
    %37 = arith.addf %35, %36 : vector<16x128xf32>
    %38 = vector.extract_strided_slice %33 {offsets = [0, 128], sizes = [16, 128], strides = [1, 1]} : vector<16x256xf32> to vector<16x128xf32>
    %39 = vector.broadcast %1 : vector<1x128xf32> to vector<16x128xf32>
    %40 = arith.addf %38, %39 : vector<16x128xf32>
    %41 = arith.mulf %37, %10 : vector<16x128xf32>
    %42 = math.tanh %41 : vector<16x128xf32>
    %cst_15 = arith.constant 5.000000e-01 : f32
    %43 = vector.broadcast %cst_15 : f32 to vector<16x128xf32>
    %44 = arith.mulf %43, %42 : vector<16x128xf32>
    %cst_16 = arith.constant 5.000000e-01 : f32
    %45 = vector.broadcast %cst_16 : f32 to vector<16x128xf32>
    %46 = arith.addf %44, %45 : vector<16x128xf32>
    %47 = arith.select %7, %42, %46 : vector<16x128xi1>, vector<16x128xf32>
    %48 = vector.extract_strided_slice %47 {offsets = [0, 0], sizes = [16, 32], strides = [1, 1]} : vector<16x128xf32> to vector<16x32xf32>
    %49 = vector.extract_strided_slice %47 {offsets = [0, 32], sizes = [16, 32], strides = [1, 1]} : vector<16x128xf32> to vector<16x32xf32>
    %50 = vector.extract_strided_slice %47 {offsets = [0, 64], sizes = [16, 32], strides = [1, 1]} : vector<16x128xf32> to vector<16x32xf32>
    %51 = vector.extract_strided_slice %47 {offsets = [0, 96], sizes = [16, 32], strides = [1, 1]} : vector<16x128xf32> to vector<16x32xf32>
    %52 = arith.mulf %49, %27 : vector<16x32xf32>
    %53 = arith.mulf %48, %50 : vector<16x32xf32>
    %54 = arith.addf %52, %53 : vector<16x32xf32>
    %55 = math.tanh %54 : vector<16x32xf32>
    %56 = arith.mulf %51, %55 : vector<16x32xf32>
    %57 = arith.mulf %40, %10 : vector<16x128xf32>
    %58 = math.tanh %57 : vector<16x128xf32>
    %cst_17 = arith.constant 5.000000e-01 : f32
    %59 = vector.broadcast %cst_17 : f32 to vector<16x128xf32>
    %60 = arith.mulf %59, %58 : vector<16x128xf32>
    %cst_18 = arith.constant 5.000000e-01 : f32
    %61 = vector.broadcast %cst_18 : f32 to vector<16x128xf32>
    %62 = arith.addf %60, %61 : vector<16x128xf32>
    %63 = arith.select %7, %58, %62 : vector<16x128xi1>, vector<16x128xf32>
    %64 = vector.extract_strided_slice %63 {offsets = [0, 0], sizes = [16, 32], strides = [1, 1]} : vector<16x128xf32> to vector<16x32xf32>
    %65 = vector.extract_strided_slice %63 {offsets = [0, 32], sizes = [16, 32], strides = [1, 1]} : vector<16x128xf32> to vector<16x32xf32>
    %66 = vector.extract_strided_slice %63 {offsets = [0, 64], sizes = [16, 32], strides = [1, 1]} : vector<16x128xf32> to vector<16x32xf32>
    %67 = vector.extract_strided_slice %63 {offsets = [0, 96], sizes = [16, 32], strides = [1, 1]} : vector<16x128xf32> to vector<16x32xf32>
    %68 = arith.mulf %65, %31 : vector<16x32xf32>
    %69 = arith.mulf %64, %66 : vector<16x32xf32>
    %70 = arith.addf %68, %69 : vector<16x32xf32>
    %71 = math.tanh %70 : vector<16x32xf32>
    %72 = arith.mulf %67, %71 : vector<16x32xf32>
    %73 = tpu.concatenate %56, %72 in 1 : vector<16x32xf32>, vector<16x32xf32> -> vector<16x64xf32>
    %cst_19 = arith.constant dense<0.000000e+00> : vector<16x256xf32>
    %74 = tpu.matmul %73, %0, %cst_19 {dimension_numbers = #tpu.dot_dimension_numbers<[1], [0], [0], [1], [0, 0, 1, 1], [], []>} : vector<16x64xf32>, vector<64x256xf32>, vector<16x256xf32> -> vector<16x256xf32>
    %c2 = arith.constant 2 : index
    %c0_20 = arith.constant 0 : index
    %c0_21 = arith.constant 0 : index
    %75 = vector.load %arg1[%c2, %c0_20, %c0_21] : memref<8x16x128xf32, #tpu.memory_space<vmem>>, vector<1x16x128xf32>
    %76 = vector.shape_cast %75 : vector<1x16x128xf32> to vector<16x128xf32>
    %77 = vector.extract_strided_slice %74 {offsets = [0, 0], sizes = [16, 128], strides = [1, 1]} : vector<16x256xf32> to vector<16x128xf32>
    %78 = arith.addf %76, %77 : vector<16x128xf32>
    %79 = vector.extract_strided_slice %74 {offsets = [0, 128], sizes = [16, 128], strides = [1, 1]} : vector<16x256xf32> to vector<16x128xf32>
    %80 = vector.broadcast %1 : vector<1x128xf32> to vector<16x128xf32>
    %81 = arith.addf %79, %80 : vector<16x128xf32>
    %82 = arith.mulf %78, %10 : vector<16x128xf32>
    %83 = math.tanh %82 : vector<16x128xf32>
    %cst_22 = arith.constant 5.000000e-01 : f32
    %84 = vector.broadcast %cst_22 : f32 to vector<16x128xf32>
    %85 = arith.mulf %84, %83 : vector<16x128xf32>
    %cst_23 = arith.constant 5.000000e-01 : f32
    %86 = vector.broadcast %cst_23 : f32 to vector<16x128xf32>
    %87 = arith.addf %85, %86 : vector<16x128xf32>
    %88 = arith.select %7, %83, %87 : vector<16x128xi1>, vector<16x128xf32>
    %89 = vector.extract_strided_slice %88 {offsets = [0, 0], sizes = [16, 32], strides = [1, 1]} : vector<16x128xf32> to vector<16x32xf32>
    %90 = vector.extract_strided_slice %88 {offsets = [0, 32], sizes = [16, 32], strides = [1, 1]} : vector<16x128xf32> to vector<16x32xf32>
    %91 = vector.extract_strided_slice %88 {offsets = [0, 64], sizes = [16, 32], strides = [1, 1]} : vector<16x128xf32> to vector<16x32xf32>
    %92 = vector.extract_strided_slice %88 {offsets = [0, 96], sizes = [16, 32], strides = [1, 1]} : vector<16x128xf32> to vector<16x32xf32>
    %93 = arith.mulf %90, %54 : vector<16x32xf32>
    %94 = arith.mulf %89, %91 : vector<16x32xf32>
    %95 = arith.addf %93, %94 : vector<16x32xf32>
    %96 = math.tanh %95 : vector<16x32xf32>
    %97 = arith.mulf %92, %96 : vector<16x32xf32>
    %98 = arith.mulf %81, %10 : vector<16x128xf32>
    %99 = math.tanh %98 : vector<16x128xf32>
    %cst_24 = arith.constant 5.000000e-01 : f32
    %100 = vector.broadcast %cst_24 : f32 to vector<16x128xf32>
    %101 = arith.mulf %100, %99 : vector<16x128xf32>
    %cst_25 = arith.constant 5.000000e-01 : f32
    %102 = vector.broadcast %cst_25 : f32 to vector<16x128xf32>
    %103 = arith.addf %101, %102 : vector<16x128xf32>
    %104 = arith.select %7, %99, %103 : vector<16x128xi1>, vector<16x128xf32>
    %105 = vector.extract_strided_slice %104 {offsets = [0, 0], sizes = [16, 32], strides = [1, 1]} : vector<16x128xf32> to vector<16x32xf32>
    %106 = vector.extract_strided_slice %104 {offsets = [0, 32], sizes = [16, 32], strides = [1, 1]} : vector<16x128xf32> to vector<16x32xf32>
    %107 = vector.extract_strided_slice %104 {offsets = [0, 64], sizes = [16, 32], strides = [1, 1]} : vector<16x128xf32> to vector<16x32xf32>
    %108 = vector.extract_strided_slice %104 {offsets = [0, 96], sizes = [16, 32], strides = [1, 1]} : vector<16x128xf32> to vector<16x32xf32>
    %109 = arith.mulf %106, %70 : vector<16x32xf32>
    %110 = arith.mulf %105, %107 : vector<16x32xf32>
    %111 = arith.addf %109, %110 : vector<16x32xf32>
    %112 = math.tanh %111 : vector<16x32xf32>
    %113 = arith.mulf %108, %112 : vector<16x32xf32>
    %114 = tpu.concatenate %97, %113 in 1 : vector<16x32xf32>, vector<16x32xf32> -> vector<16x64xf32>
    %cst_26 = arith.constant dense<0.000000e+00> : vector<16x256xf32>
    %115 = tpu.matmul %114, %0, %cst_26 {dimension_numbers = #tpu.dot_dimension_numbers<[1], [0], [0], [1], [0, 0, 1, 1], [], []>} : vector<16x64xf32>, vector<64x256xf32>, vector<16x256xf32> -> vector<16x256xf32>
    %c3 = arith.constant 3 : index
    %c0_27 = arith.constant 0 : index
    %c0_28 = arith.constant 0 : index
    %116 = vector.load %arg1[%c3, %c0_27, %c0_28] : memref<8x16x128xf32, #tpu.memory_space<vmem>>, vector<1x16x128xf32>
    %117 = vector.shape_cast %116 : vector<1x16x128xf32> to vector<16x128xf32>
    %118 = vector.extract_strided_slice %115 {offsets = [0, 0], sizes = [16, 128], strides = [1, 1]} : vector<16x256xf32> to vector<16x128xf32>
    %119 = arith.addf %117, %118 : vector<16x128xf32>
    %120 = vector.extract_strided_slice %115 {offsets = [0, 128], sizes = [16, 128], strides = [1, 1]} : vector<16x256xf32> to vector<16x128xf32>
    %121 = vector.broadcast %1 : vector<1x128xf32> to vector<16x128xf32>
    %122 = arith.addf %120, %121 : vector<16x128xf32>
    %123 = arith.mulf %119, %10 : vector<16x128xf32>
    %124 = math.tanh %123 : vector<16x128xf32>
    %cst_29 = arith.constant 5.000000e-01 : f32
    %125 = vector.broadcast %cst_29 : f32 to vector<16x128xf32>
    %126 = arith.mulf %125, %124 : vector<16x128xf32>
    %cst_30 = arith.constant 5.000000e-01 : f32
    %127 = vector.broadcast %cst_30 : f32 to vector<16x128xf32>
    %128 = arith.addf %126, %127 : vector<16x128xf32>
    %129 = arith.select %7, %124, %128 : vector<16x128xi1>, vector<16x128xf32>
    %130 = vector.extract_strided_slice %129 {offsets = [0, 0], sizes = [16, 32], strides = [1, 1]} : vector<16x128xf32> to vector<16x32xf32>
    %131 = vector.extract_strided_slice %129 {offsets = [0, 32], sizes = [16, 32], strides = [1, 1]} : vector<16x128xf32> to vector<16x32xf32>
    %132 = vector.extract_strided_slice %129 {offsets = [0, 64], sizes = [16, 32], strides = [1, 1]} : vector<16x128xf32> to vector<16x32xf32>
    %133 = vector.extract_strided_slice %129 {offsets = [0, 96], sizes = [16, 32], strides = [1, 1]} : vector<16x128xf32> to vector<16x32xf32>
    %134 = arith.mulf %131, %95 : vector<16x32xf32>
    %135 = arith.mulf %130, %132 : vector<16x32xf32>
    %136 = arith.addf %134, %135 : vector<16x32xf32>
    %137 = math.tanh %136 : vector<16x32xf32>
    %138 = arith.mulf %133, %137 : vector<16x32xf32>
    %139 = arith.mulf %122, %10 : vector<16x128xf32>
    %140 = math.tanh %139 : vector<16x128xf32>
    %cst_31 = arith.constant 5.000000e-01 : f32
    %141 = vector.broadcast %cst_31 : f32 to vector<16x128xf32>
    %142 = arith.mulf %141, %140 : vector<16x128xf32>
    %cst_32 = arith.constant 5.000000e-01 : f32
    %143 = vector.broadcast %cst_32 : f32 to vector<16x128xf32>
    %144 = arith.addf %142, %143 : vector<16x128xf32>
    %145 = arith.select %7, %140, %144 : vector<16x128xi1>, vector<16x128xf32>
    %146 = vector.extract_strided_slice %145 {offsets = [0, 0], sizes = [16, 32], strides = [1, 1]} : vector<16x128xf32> to vector<16x32xf32>
    %147 = vector.extract_strided_slice %145 {offsets = [0, 32], sizes = [16, 32], strides = [1, 1]} : vector<16x128xf32> to vector<16x32xf32>
    %148 = vector.extract_strided_slice %145 {offsets = [0, 64], sizes = [16, 32], strides = [1, 1]} : vector<16x128xf32> to vector<16x32xf32>
    %149 = vector.extract_strided_slice %145 {offsets = [0, 96], sizes = [16, 32], strides = [1, 1]} : vector<16x128xf32> to vector<16x32xf32>
    %150 = arith.mulf %147, %111 : vector<16x32xf32>
    %151 = arith.mulf %146, %148 : vector<16x32xf32>
    %152 = arith.addf %150, %151 : vector<16x32xf32>
    %153 = math.tanh %152 : vector<16x32xf32>
    %154 = arith.mulf %149, %153 : vector<16x32xf32>
    %155 = tpu.concatenate %138, %154 in 1 : vector<16x32xf32>, vector<16x32xf32> -> vector<16x64xf32>
    %cst_33 = arith.constant dense<0.000000e+00> : vector<16x256xf32>
    %156 = tpu.matmul %155, %0, %cst_33 {dimension_numbers = #tpu.dot_dimension_numbers<[1], [0], [0], [1], [0, 0, 1, 1], [], []>} : vector<16x64xf32>, vector<64x256xf32>, vector<16x256xf32> -> vector<16x256xf32>
    %c4 = arith.constant 4 : index
    %c0_34 = arith.constant 0 : index
    %c0_35 = arith.constant 0 : index
    %157 = vector.load %arg1[%c4, %c0_34, %c0_35] : memref<8x16x128xf32, #tpu.memory_space<vmem>>, vector<1x16x128xf32>
    %158 = vector.shape_cast %157 : vector<1x16x128xf32> to vector<16x128xf32>
    %159 = vector.extract_strided_slice %156 {offsets = [0, 0], sizes = [16, 128], strides = [1, 1]} : vector<16x256xf32> to vector<16x128xf32>
    %160 = arith.addf %158, %159 : vector<16x128xf32>
    %161 = vector.extract_strided_slice %156 {offsets = [0, 128], sizes = [16, 128], strides = [1, 1]} : vector<16x256xf32> to vector<16x128xf32>
    %162 = vector.broadcast %1 : vector<1x128xf32> to vector<16x128xf32>
    %163 = arith.addf %161, %162 : vector<16x128xf32>
    %164 = arith.mulf %160, %10 : vector<16x128xf32>
    %165 = math.tanh %164 : vector<16x128xf32>
    %cst_36 = arith.constant 5.000000e-01 : f32
    %166 = vector.broadcast %cst_36 : f32 to vector<16x128xf32>
    %167 = arith.mulf %166, %165 : vector<16x128xf32>
    %cst_37 = arith.constant 5.000000e-01 : f32
    %168 = vector.broadcast %cst_37 : f32 to vector<16x128xf32>
    %169 = arith.addf %167, %168 : vector<16x128xf32>
    %170 = arith.select %7, %165, %169 : vector<16x128xi1>, vector<16x128xf32>
    %171 = vector.extract_strided_slice %170 {offsets = [0, 0], sizes = [16, 32], strides = [1, 1]} : vector<16x128xf32> to vector<16x32xf32>
    %172 = vector.extract_strided_slice %170 {offsets = [0, 32], sizes = [16, 32], strides = [1, 1]} : vector<16x128xf32> to vector<16x32xf32>
    %173 = vector.extract_strided_slice %170 {offsets = [0, 64], sizes = [16, 32], strides = [1, 1]} : vector<16x128xf32> to vector<16x32xf32>
    %174 = vector.extract_strided_slice %170 {offsets = [0, 96], sizes = [16, 32], strides = [1, 1]} : vector<16x128xf32> to vector<16x32xf32>
    %175 = arith.mulf %172, %136 : vector<16x32xf32>
    %176 = arith.mulf %171, %173 : vector<16x32xf32>
    %177 = arith.addf %175, %176 : vector<16x32xf32>
    %178 = math.tanh %177 : vector<16x32xf32>
    %179 = arith.mulf %174, %178 : vector<16x32xf32>
    %180 = arith.mulf %163, %10 : vector<16x128xf32>
    %181 = math.tanh %180 : vector<16x128xf32>
    %cst_38 = arith.constant 5.000000e-01 : f32
    %182 = vector.broadcast %cst_38 : f32 to vector<16x128xf32>
    %183 = arith.mulf %182, %181 : vector<16x128xf32>
    %cst_39 = arith.constant 5.000000e-01 : f32
    %184 = vector.broadcast %cst_39 : f32 to vector<16x128xf32>
    %185 = arith.addf %183, %184 : vector<16x128xf32>
    %186 = arith.select %7, %181, %185 : vector<16x128xi1>, vector<16x128xf32>
    %187 = vector.extract_strided_slice %186 {offsets = [0, 0], sizes = [16, 32], strides = [1, 1]} : vector<16x128xf32> to vector<16x32xf32>
    %188 = vector.extract_strided_slice %186 {offsets = [0, 32], sizes = [16, 32], strides = [1, 1]} : vector<16x128xf32> to vector<16x32xf32>
    %189 = vector.extract_strided_slice %186 {offsets = [0, 64], sizes = [16, 32], strides = [1, 1]} : vector<16x128xf32> to vector<16x32xf32>
    %190 = vector.extract_strided_slice %186 {offsets = [0, 96], sizes = [16, 32], strides = [1, 1]} : vector<16x128xf32> to vector<16x32xf32>
    %191 = arith.mulf %188, %152 : vector<16x32xf32>
    %192 = arith.mulf %187, %189 : vector<16x32xf32>
    %193 = arith.addf %191, %192 : vector<16x32xf32>
    %194 = math.tanh %193 : vector<16x32xf32>
    %195 = arith.mulf %190, %194 : vector<16x32xf32>
    %196 = tpu.concatenate %179, %195 in 1 : vector<16x32xf32>, vector<16x32xf32> -> vector<16x64xf32>
    %cst_40 = arith.constant dense<0.000000e+00> : vector<16x256xf32>
    %197 = tpu.matmul %196, %0, %cst_40 {dimension_numbers = #tpu.dot_dimension_numbers<[1], [0], [0], [1], [0, 0, 1, 1], [], []>} : vector<16x64xf32>, vector<64x256xf32>, vector<16x256xf32> -> vector<16x256xf32>
    %c5 = arith.constant 5 : index
    %c0_41 = arith.constant 0 : index
    %c0_42 = arith.constant 0 : index
    %198 = vector.load %arg1[%c5, %c0_41, %c0_42] : memref<8x16x128xf32, #tpu.memory_space<vmem>>, vector<1x16x128xf32>
    %199 = vector.shape_cast %198 : vector<1x16x128xf32> to vector<16x128xf32>
    %200 = vector.extract_strided_slice %197 {offsets = [0, 0], sizes = [16, 128], strides = [1, 1]} : vector<16x256xf32> to vector<16x128xf32>
    %201 = arith.addf %199, %200 : vector<16x128xf32>
    %202 = vector.extract_strided_slice %197 {offsets = [0, 128], sizes = [16, 128], strides = [1, 1]} : vector<16x256xf32> to vector<16x128xf32>
    %203 = vector.broadcast %1 : vector<1x128xf32> to vector<16x128xf32>
    %204 = arith.addf %202, %203 : vector<16x128xf32>
    %205 = arith.mulf %201, %10 : vector<16x128xf32>
    %206 = math.tanh %205 : vector<16x128xf32>
    %cst_43 = arith.constant 5.000000e-01 : f32
    %207 = vector.broadcast %cst_43 : f32 to vector<16x128xf32>
    %208 = arith.mulf %207, %206 : vector<16x128xf32>
    %cst_44 = arith.constant 5.000000e-01 : f32
    %209 = vector.broadcast %cst_44 : f32 to vector<16x128xf32>
    %210 = arith.addf %208, %209 : vector<16x128xf32>
    %211 = arith.select %7, %206, %210 : vector<16x128xi1>, vector<16x128xf32>
    %212 = vector.extract_strided_slice %211 {offsets = [0, 0], sizes = [16, 32], strides = [1, 1]} : vector<16x128xf32> to vector<16x32xf32>
    %213 = vector.extract_strided_slice %211 {offsets = [0, 32], sizes = [16, 32], strides = [1, 1]} : vector<16x128xf32> to vector<16x32xf32>
    %214 = vector.extract_strided_slice %211 {offsets = [0, 64], sizes = [16, 32], strides = [1, 1]} : vector<16x128xf32> to vector<16x32xf32>
    %215 = vector.extract_strided_slice %211 {offsets = [0, 96], sizes = [16, 32], strides = [1, 1]} : vector<16x128xf32> to vector<16x32xf32>
    %216 = arith.mulf %213, %177 : vector<16x32xf32>
    %217 = arith.mulf %212, %214 : vector<16x32xf32>
    %218 = arith.addf %216, %217 : vector<16x32xf32>
    %219 = math.tanh %218 : vector<16x32xf32>
    %220 = arith.mulf %215, %219 : vector<16x32xf32>
    %221 = arith.mulf %204, %10 : vector<16x128xf32>
    %222 = math.tanh %221 : vector<16x128xf32>
    %cst_45 = arith.constant 5.000000e-01 : f32
    %223 = vector.broadcast %cst_45 : f32 to vector<16x128xf32>
    %224 = arith.mulf %223, %222 : vector<16x128xf32>
    %cst_46 = arith.constant 5.000000e-01 : f32
    %225 = vector.broadcast %cst_46 : f32 to vector<16x128xf32>
    %226 = arith.addf %224, %225 : vector<16x128xf32>
    %227 = arith.select %7, %222, %226 : vector<16x128xi1>, vector<16x128xf32>
    %228 = vector.extract_strided_slice %227 {offsets = [0, 0], sizes = [16, 32], strides = [1, 1]} : vector<16x128xf32> to vector<16x32xf32>
    %229 = vector.extract_strided_slice %227 {offsets = [0, 32], sizes = [16, 32], strides = [1, 1]} : vector<16x128xf32> to vector<16x32xf32>
    %230 = vector.extract_strided_slice %227 {offsets = [0, 64], sizes = [16, 32], strides = [1, 1]} : vector<16x128xf32> to vector<16x32xf32>
    %231 = vector.extract_strided_slice %227 {offsets = [0, 96], sizes = [16, 32], strides = [1, 1]} : vector<16x128xf32> to vector<16x32xf32>
    %232 = arith.mulf %229, %193 : vector<16x32xf32>
    %233 = arith.mulf %228, %230 : vector<16x32xf32>
    %234 = arith.addf %232, %233 : vector<16x32xf32>
    %235 = math.tanh %234 : vector<16x32xf32>
    %236 = arith.mulf %231, %235 : vector<16x32xf32>
    %237 = tpu.concatenate %220, %236 in 1 : vector<16x32xf32>, vector<16x32xf32> -> vector<16x64xf32>
    %cst_47 = arith.constant dense<0.000000e+00> : vector<16x256xf32>
    %238 = tpu.matmul %237, %0, %cst_47 {dimension_numbers = #tpu.dot_dimension_numbers<[1], [0], [0], [1], [0, 0, 1, 1], [], []>} : vector<16x64xf32>, vector<64x256xf32>, vector<16x256xf32> -> vector<16x256xf32>
    %c6 = arith.constant 6 : index
    %c0_48 = arith.constant 0 : index
    %c0_49 = arith.constant 0 : index
    %239 = vector.load %arg1[%c6, %c0_48, %c0_49] : memref<8x16x128xf32, #tpu.memory_space<vmem>>, vector<1x16x128xf32>
    %240 = vector.shape_cast %239 : vector<1x16x128xf32> to vector<16x128xf32>
    %241 = vector.extract_strided_slice %238 {offsets = [0, 0], sizes = [16, 128], strides = [1, 1]} : vector<16x256xf32> to vector<16x128xf32>
    %242 = arith.addf %240, %241 : vector<16x128xf32>
    %243 = vector.extract_strided_slice %238 {offsets = [0, 128], sizes = [16, 128], strides = [1, 1]} : vector<16x256xf32> to vector<16x128xf32>
    %244 = vector.broadcast %1 : vector<1x128xf32> to vector<16x128xf32>
    %245 = arith.addf %243, %244 : vector<16x128xf32>
    %246 = arith.mulf %242, %10 : vector<16x128xf32>
    %247 = math.tanh %246 : vector<16x128xf32>
    %cst_50 = arith.constant 5.000000e-01 : f32
    %248 = vector.broadcast %cst_50 : f32 to vector<16x128xf32>
    %249 = arith.mulf %248, %247 : vector<16x128xf32>
    %cst_51 = arith.constant 5.000000e-01 : f32
    %250 = vector.broadcast %cst_51 : f32 to vector<16x128xf32>
    %251 = arith.addf %249, %250 : vector<16x128xf32>
    %252 = arith.select %7, %247, %251 : vector<16x128xi1>, vector<16x128xf32>
    %253 = vector.extract_strided_slice %252 {offsets = [0, 0], sizes = [16, 32], strides = [1, 1]} : vector<16x128xf32> to vector<16x32xf32>
    %254 = vector.extract_strided_slice %252 {offsets = [0, 32], sizes = [16, 32], strides = [1, 1]} : vector<16x128xf32> to vector<16x32xf32>
    %255 = vector.extract_strided_slice %252 {offsets = [0, 64], sizes = [16, 32], strides = [1, 1]} : vector<16x128xf32> to vector<16x32xf32>
    %256 = vector.extract_strided_slice %252 {offsets = [0, 96], sizes = [16, 32], strides = [1, 1]} : vector<16x128xf32> to vector<16x32xf32>
    %257 = arith.mulf %254, %218 : vector<16x32xf32>
    %258 = arith.mulf %253, %255 : vector<16x32xf32>
    %259 = arith.addf %257, %258 : vector<16x32xf32>
    %260 = math.tanh %259 : vector<16x32xf32>
    %261 = arith.mulf %256, %260 : vector<16x32xf32>
    %262 = arith.mulf %245, %10 : vector<16x128xf32>
    %263 = math.tanh %262 : vector<16x128xf32>
    %cst_52 = arith.constant 5.000000e-01 : f32
    %264 = vector.broadcast %cst_52 : f32 to vector<16x128xf32>
    %265 = arith.mulf %264, %263 : vector<16x128xf32>
    %cst_53 = arith.constant 5.000000e-01 : f32
    %266 = vector.broadcast %cst_53 : f32 to vector<16x128xf32>
    %267 = arith.addf %265, %266 : vector<16x128xf32>
    %268 = arith.select %7, %263, %267 : vector<16x128xi1>, vector<16x128xf32>
    %269 = vector.extract_strided_slice %268 {offsets = [0, 0], sizes = [16, 32], strides = [1, 1]} : vector<16x128xf32> to vector<16x32xf32>
    %270 = vector.extract_strided_slice %268 {offsets = [0, 32], sizes = [16, 32], strides = [1, 1]} : vector<16x128xf32> to vector<16x32xf32>
    %271 = vector.extract_strided_slice %268 {offsets = [0, 64], sizes = [16, 32], strides = [1, 1]} : vector<16x128xf32> to vector<16x32xf32>
    %272 = vector.extract_strided_slice %268 {offsets = [0, 96], sizes = [16, 32], strides = [1, 1]} : vector<16x128xf32> to vector<16x32xf32>
    %273 = arith.mulf %270, %234 : vector<16x32xf32>
    %274 = arith.mulf %269, %271 : vector<16x32xf32>
    %275 = arith.addf %273, %274 : vector<16x32xf32>
    %276 = math.tanh %275 : vector<16x32xf32>
    %277 = arith.mulf %272, %276 : vector<16x32xf32>
    %278 = tpu.concatenate %261, %277 in 1 : vector<16x32xf32>, vector<16x32xf32> -> vector<16x64xf32>
    %cst_54 = arith.constant dense<0.000000e+00> : vector<16x256xf32>
    %279 = tpu.matmul %278, %0, %cst_54 {dimension_numbers = #tpu.dot_dimension_numbers<[1], [0], [0], [1], [0, 0, 1, 1], [], []>} : vector<16x64xf32>, vector<64x256xf32>, vector<16x256xf32> -> vector<16x256xf32>
    %c7 = arith.constant 7 : index
    %c0_55 = arith.constant 0 : index
    %c0_56 = arith.constant 0 : index
    %280 = vector.load %arg1[%c7, %c0_55, %c0_56] : memref<8x16x128xf32, #tpu.memory_space<vmem>>, vector<1x16x128xf32>
    %281 = vector.shape_cast %280 : vector<1x16x128xf32> to vector<16x128xf32>
    %282 = vector.extract_strided_slice %279 {offsets = [0, 0], sizes = [16, 128], strides = [1, 1]} : vector<16x256xf32> to vector<16x128xf32>
    %283 = arith.addf %281, %282 : vector<16x128xf32>
    %284 = vector.extract_strided_slice %279 {offsets = [0, 128], sizes = [16, 128], strides = [1, 1]} : vector<16x256xf32> to vector<16x128xf32>
    %285 = vector.broadcast %1 : vector<1x128xf32> to vector<16x128xf32>
    %286 = arith.addf %284, %285 : vector<16x128xf32>
    %287 = arith.mulf %283, %10 : vector<16x128xf32>
    %288 = math.tanh %287 : vector<16x128xf32>
    %cst_57 = arith.constant 5.000000e-01 : f32
    %289 = vector.broadcast %cst_57 : f32 to vector<16x128xf32>
    %290 = arith.mulf %289, %288 : vector<16x128xf32>
    %cst_58 = arith.constant 5.000000e-01 : f32
    %291 = vector.broadcast %cst_58 : f32 to vector<16x128xf32>
    %292 = arith.addf %290, %291 : vector<16x128xf32>
    %293 = arith.select %7, %288, %292 : vector<16x128xi1>, vector<16x128xf32>
    %294 = vector.extract_strided_slice %293 {offsets = [0, 0], sizes = [16, 32], strides = [1, 1]} : vector<16x128xf32> to vector<16x32xf32>
    %295 = vector.extract_strided_slice %293 {offsets = [0, 32], sizes = [16, 32], strides = [1, 1]} : vector<16x128xf32> to vector<16x32xf32>
    %296 = vector.extract_strided_slice %293 {offsets = [0, 64], sizes = [16, 32], strides = [1, 1]} : vector<16x128xf32> to vector<16x32xf32>
    %297 = vector.extract_strided_slice %293 {offsets = [0, 96], sizes = [16, 32], strides = [1, 1]} : vector<16x128xf32> to vector<16x32xf32>
    %298 = arith.mulf %295, %259 : vector<16x32xf32>
    %299 = arith.mulf %294, %296 : vector<16x32xf32>
    %300 = arith.addf %298, %299 : vector<16x32xf32>
    %301 = math.tanh %300 : vector<16x32xf32>
    %302 = arith.mulf %297, %301 : vector<16x32xf32>
    %303 = arith.mulf %286, %10 : vector<16x128xf32>
    %304 = math.tanh %303 : vector<16x128xf32>
    %cst_59 = arith.constant 5.000000e-01 : f32
    %305 = vector.broadcast %cst_59 : f32 to vector<16x128xf32>
    %306 = arith.mulf %305, %304 : vector<16x128xf32>
    %cst_60 = arith.constant 5.000000e-01 : f32
    %307 = vector.broadcast %cst_60 : f32 to vector<16x128xf32>
    %308 = arith.addf %306, %307 : vector<16x128xf32>
    %309 = arith.select %7, %304, %308 : vector<16x128xi1>, vector<16x128xf32>
    %310 = vector.extract_strided_slice %309 {offsets = [0, 0], sizes = [16, 32], strides = [1, 1]} : vector<16x128xf32> to vector<16x32xf32>
    %311 = vector.extract_strided_slice %309 {offsets = [0, 32], sizes = [16, 32], strides = [1, 1]} : vector<16x128xf32> to vector<16x32xf32>
    %312 = vector.extract_strided_slice %309 {offsets = [0, 64], sizes = [16, 32], strides = [1, 1]} : vector<16x128xf32> to vector<16x32xf32>
    %313 = vector.extract_strided_slice %309 {offsets = [0, 96], sizes = [16, 32], strides = [1, 1]} : vector<16x128xf32> to vector<16x32xf32>
    %314 = arith.mulf %311, %275 : vector<16x32xf32>
    %315 = arith.mulf %310, %312 : vector<16x32xf32>
    %316 = arith.addf %314, %315 : vector<16x32xf32>
    %317 = math.tanh %316 : vector<16x32xf32>
    %318 = arith.mulf %313, %317 : vector<16x32xf32>
    %319 = tpu.concatenate %302, %318 in 1 : vector<16x32xf32>, vector<16x32xf32> -> vector<16x64xf32>
    %320 = vector.extract_strided_slice %0 {offsets = [0, 128], sizes = [64, 128], strides = [1, 1]} : vector<64x256xf32> to vector<64x128xf32>
    %cst_61 = arith.constant dense<0.000000e+00> : vector<16x128xf32>
    %321 = tpu.matmul %319, %320, %cst_61 {dimension_numbers = #tpu.dot_dimension_numbers<[1], [0], [0], [1], [0, 0, 1, 1], [], []>} : vector<16x64xf32>, vector<64x128xf32>, vector<16x128xf32> -> vector<16x128xf32>
    %322 = vector.broadcast %1 : vector<1x128xf32> to vector<16x128xf32>
    %323 = arith.addf %321, %322 : vector<16x128xf32>
    %324 = arith.mulf %323, %10 : vector<16x128xf32>
    %325 = math.tanh %324 : vector<16x128xf32>
    %cst_62 = arith.constant 5.000000e-01 : f32
    %326 = vector.broadcast %cst_62 : f32 to vector<16x128xf32>
    %327 = arith.mulf %326, %325 : vector<16x128xf32>
    %cst_63 = arith.constant 5.000000e-01 : f32
    %328 = vector.broadcast %cst_63 : f32 to vector<16x128xf32>
    %329 = arith.addf %327, %328 : vector<16x128xf32>
    %330 = arith.select %7, %325, %329 : vector<16x128xi1>, vector<16x128xf32>
    %331 = vector.extract_strided_slice %330 {offsets = [0, 0], sizes = [16, 32], strides = [1, 1]} : vector<16x128xf32> to vector<16x32xf32>
    %332 = vector.extract_strided_slice %330 {offsets = [0, 32], sizes = [16, 32], strides = [1, 1]} : vector<16x128xf32> to vector<16x32xf32>
    %333 = vector.extract_strided_slice %330 {offsets = [0, 64], sizes = [16, 32], strides = [1, 1]} : vector<16x128xf32> to vector<16x32xf32>
    %334 = vector.extract_strided_slice %330 {offsets = [0, 96], sizes = [16, 32], strides = [1, 1]} : vector<16x128xf32> to vector<16x32xf32>
    %335 = arith.mulf %332, %316 : vector<16x32xf32>
    %336 = arith.mulf %331, %333 : vector<16x32xf32>
    %337 = arith.addf %335, %336 : vector<16x32xf32>
    %338 = math.tanh %337 : vector<16x32xf32>
    %339 = arith.mulf %334, %338 : vector<16x32xf32>
    %c0_64 = arith.constant 0 : index
    %c0_65 = arith.constant 0 : index
    %340 = vector.load %arg4[%c0_64, %c0_65] : memref<32x16xf32, #tpu.memory_space<vmem>>, vector<32x16xf32>
    %cst_66 = arith.constant dense<0.000000e+00> : vector<16x16xf32>
    %341 = tpu.matmul %339, %340, %cst_66 {dimension_numbers = #tpu.dot_dimension_numbers<[1], [0], [0], [1], [0, 0, 1, 1], [], []>} : vector<16x32xf32>, vector<32x16xf32>, vector<16x16xf32> -> vector<16x16xf32>
    %c0_67 = arith.constant 0 : index
    %c0_68 = arith.constant 0 : index
    %342 = vector.load %arg5[%c0_67, %c0_68] : memref<1x16xf32, #tpu.memory_space<vmem>>, vector<1x16xf32>
    %343 = vector.broadcast %342 : vector<1x16xf32> to vector<16x16xf32>
    %344 = arith.addf %341, %343 : vector<16x16xf32>
    %cst_69 = arith.constant 0.000000e+00 : f32
    %345 = vector.broadcast %cst_69 : f32 to vector<16x16xf32>
    %346 = arith.maximumf %344, %345 : vector<16x16xf32>
    %c0_70 = arith.constant 0 : index
    %c0_71 = arith.constant 0 : index
    %347 = vector.load %arg6[%c0_70, %c0_71] : memref<16x16xf32, #tpu.memory_space<vmem>>, vector<16x16xf32>
    %cst_72 = arith.constant dense<0.000000e+00> : vector<16x16xf32>
    %348 = tpu.matmul %346, %347, %cst_72 {dimension_numbers = #tpu.dot_dimension_numbers<[1], [0], [0], [1], [0, 0, 1, 1], [], []>} : vector<16x16xf32>, vector<16x16xf32>, vector<16x16xf32> -> vector<16x16xf32>
    %c0_73 = arith.constant 0 : index
    %c0_74 = arith.constant 0 : index
    %349 = vector.load %arg7[%c0_73, %c0_74] : memref<1x16xf32, #tpu.memory_space<vmem>>, vector<1x16xf32>
    %350 = vector.broadcast %349 : vector<1x16xf32> to vector<16x16xf32>
    %351 = arith.addf %348, %350 : vector<16x16xf32>
    %c0_75 = arith.constant 0 : index
    %c0_76 = arith.constant 0 : index
    %352 = vector.load %arg8[%c0_75, %c0_76] : memref<16x32xf32, #tpu.memory_space<vmem>>, vector<16x32xf32>
    %cst_77 = arith.constant dense<0.000000e+00> : vector<16x32xf32>
    %353 = tpu.matmul %351, %352, %cst_77 {dimension_numbers = #tpu.dot_dimension_numbers<[1], [0], [0], [1], [0, 0, 1, 1], [], []>} : vector<16x16xf32>, vector<16x32xf32>, vector<16x32xf32> -> vector<16x32xf32>
    %c0_78 = arith.constant 0 : index
    %c0_79 = arith.constant 0 : index
    %354 = vector.load %arg9[%c0_78, %c0_79] : memref<1x32xf32, #tpu.memory_space<vmem>>, vector<1x32xf32>
    %355 = vector.broadcast %354 : vector<1x32xf32> to vector<16x32xf32>
    %356 = arith.addf %353, %355 : vector<16x32xf32>
    %cst_80 = arith.constant 0.000000e+00 : f32
    %357 = vector.broadcast %cst_80 : f32 to vector<16x32xf32>
    %358 = arith.maximumf %356, %357 : vector<16x32xf32>
    %c0_81 = arith.constant 0 : index
    %c0_82 = arith.constant 0 : index
    %359 = vector.load %arg10[%c0_81, %c0_82] : memref<32x128xf32, #tpu.memory_space<vmem>>, vector<32x128xf32>
    %cst_83 = arith.constant dense<0.000000e+00> : vector<16x128xf32>
    %360 = tpu.matmul %358, %359, %cst_83 {dimension_numbers = #tpu.dot_dimension_numbers<[1], [0], [0], [1], [0, 0, 1, 1], [], []>} : vector<16x32xf32>, vector<32x128xf32>, vector<16x128xf32> -> vector<16x128xf32>
    %c0_84 = arith.constant 0 : index
    %c0_85 = arith.constant 0 : index
    %361 = vector.load %arg11[%c0_84, %c0_85] : memref<1x128xf32, #tpu.memory_space<vmem>>, vector<1x128xf32>
    %362 = vector.broadcast %361 : vector<1x128xf32> to vector<16x128xf32>
    %363 = arith.addf %360, %362 : vector<16x128xf32>
    %c0_86 = arith.constant 0 : index
    %c0_87 = arith.constant 0 : index
    %364 = vector.load %arg12[%c0_86, %c0_87] : memref<16x128xf32, #tpu.memory_space<vmem>>, vector<16x128xf32>
    tpu.vector_store %arg12[%c0_86, %c0_87], %363 {strides = array<i32>} : memref<16x128xf32, #tpu.memory_space<vmem>>, vector<16x128xf32>,
    return
  }
  func.func @transform_0(%arg0: i32) -> (i32, i32, i32) {
    %c0_i32 = arith.constant 0 : i32
    %c0_i32_0 = arith.constant 0 : i32
    %c0_i32_1 = arith.constant 0 : i32
    return %c0_i32, %arg0, %c0_i32_0 : i32, i32, i32
  }
  func.func @transform_1(%arg0: i32) -> (i32, i32) {
    %c0_i32 = arith.constant 0 : i32
    %c0_i32_0 = arith.constant 0 : i32
    %c0_i32_1 = arith.constant 0 : i32
    return %c0_i32, %c0_i32_0 : i32, i32
  }
  func.func @transform_2(%arg0: i32) -> (i32, i32) {
    %c0_i32 = arith.constant 0 : i32
    %c0_i32_0 = arith.constant 0 : i32
    %c0_i32_1 = arith.constant 0 : i32
    return %c0_i32, %c0_i32_0 : i32, i32
  }
  func.func @transform_3(%arg0: i32) -> (i32, i32) {
    %c0_i32 = arith.constant 0 : i32
    %c0_i32_0 = arith.constant 0 : i32
    %c0_i32_1 = arith.constant 0 : i32
    return %c0_i32, %c0_i32_0 : i32, i32
  }
  func.func @transform_4(%arg0: i32) -> (i32, i32) {
    %c0_i32 = arith.constant 0 : i32
    %c0_i32_0 = arith.constant 0 : i32
    %c0_i32_1 = arith.constant 0 : i32
    return %c0_i32, %c0_i32_0 : i32, i32
  }
  func.func @transform_5(%arg0: i32) -> (i32, i32) {
    %c0_i32 = arith.constant 0 : i32
    %c0_i32_0 = arith.constant 0 : i32
    %c0_i32_1 = arith.constant 0 : i32
    return %c0_i32, %c0_i32_0 : i32, i32
  }
  func.func @transform_6(%arg0: i32) -> (i32, i32) {
    %c0_i32 = arith.constant 0 : i32
    %c0_i32_0 = arith.constant 0 : i32
    %c0_i32_1 = arith.constant 0 : i32
    return %c0_i32, %c0_i32_0 : i32, i32
  }
  func.func @transform_7(%arg0: i32) -> (i32, i32) {
    %c0_i32 = arith.constant 0 : i32
    %c0_i32_0 = arith.constant 0 : i32
    %c0_i32_1 = arith.constant 0 : i32
    return %c0_i32, %c0_i32_0 : i32, i32
  }
  func.func @transform_8(%arg0: i32) -> (i32, i32) {
    %c0_i32 = arith.constant 0 : i32
    %c0_i32_0 = arith.constant 0 : i32
    %c0_i32_1 = arith.constant 0 : i32
    return %c0_i32, %c0_i32_0 : i32, i32
  }
  func.func @transform_9(%arg0: i32) -> (i32, i32) {
    %c0_i32 = arith.constant 0 : i32
    %c0_i32_0 = arith.constant 0 : i32
    %c0_i32_1 = arith.constant 0 : i32
    return %c0_i32, %c0_i32_0 : i32, i32
  }
  func.func @transform_10(%arg0: i32) -> (i32, i32) {
    %c0_i32 = arith.constant 0 : i32
    %c0_i32_0 = arith.constant 0 : i32
    %c0_i32_1 = arith.constant 0 : i32
    return %c0_i32, %c0_i32_0 : i32, i32
  }
  func.func @transform_11(%arg0: i32) -> (i32, i32) {
    %c0_i32 = arith.constant 0 : i32
    %c0_i32_0 = arith.constant 0 : i32
    return %arg0, %c0_i32 : i32, i32
  }
}

</mosaic_0001>

<bundles_post_ra>
// kernel: lstm_gcn_forward.1
= control target key start
LH: loop header
LB: loop body
LE: loop exit
PB: predicated region body
PF: predicated region fallthrough
CT: control target
= control target key end

     0   :  { %v55_v0 = vlaneseq  ;;  %v1706_v5 = vmov 0.5   ;;  %s1707_s21 = smov 64   ;;  %s1708_s22 = smov 32   ;;  %vm115_vm3 = vcmask 261120   ;;  %vm118_vm4 = vcmask 523264   ;;  %s2511_s0 = inlined_call_operand.vmem [shape: f32[8,16,128], index: 0, kind: input, shape index: {}]   ;;  %s2512_s1 = inlined_call_operand.vmem [shape: f32[64,256], index: 1, kind: input, shape index: {}]   ;;  %s2513_s2 = inlined_call_operand.vmem [shape: f32[1,128], index: 2, kind: input, shape index: {}]   ;;  %s2514_s3 = inlined_call_operand.vmem [shape: f32[32,16], index: 3, kind: input, shape index: {}]   ;;  %s2515_s4 = inlined_call_operand.vmem [shape: f32[1,16], index: 4, kind: input, shape index: {}]   ;;  %s2516_s6 = inlined_call_operand.vmem [shape: f32[1,16], index: 6, kind: input, shape index: {}]   ;;  %s2517_s5 = inlined_call_operand.vmem [shape: f32[16,16], index: 5, kind: input, shape index: {}]   ;;  %s2518_s7 = inlined_call_operand.vmem [shape: f32[16,32], index: 7, kind: input, shape index: {}]   ;;  %s2519_s8 = inlined_call_operand.vmem [shape: f32[1,32], index: 8, kind: input, shape index: {}]   ;;  %s2520_s9 = inlined_call_operand.vmem [shape: f32[32,128], index: 9, kind: input, shape index: {}]   ;;  %s2521_s10 = inlined_call_operand.vmem [shape: f32[1,128], index: 10, kind: input, shape index: {}]   ;;  %s2522_s11 = inlined_call_operand.vmem [shape: f32[16,128], index: 11, kind: output, shape index: {}]  }
   0x1   :  { %v61_v2 = vld [vmem:[%s2511_s0] sm:$0xff]  ;;  %v62_v3 = vld [vmem:[%s2511_s0 + $0x8] sm:$0xff]  ;;  %v1814_v29 = vld [vmem:[%s2512_s1 + $0x70] sm:$0xff]  ;;  %vm1399_vm5 = vcmask 130048  }
   0x2   :  { %v56_v1 = vand.u32 127, %v55_v0  ;;  %v1819_v30 = vld [vmem:[%s2512_s1 + $0x78] sm:$0xff]  ;;  %v1824_v31 = vld [vmem:[%s2512_s1 + $0x60] sm:$0xff]  ;;  %133 = vmatpush.msra.mxu0 %v1814_v29  ;;  %v1831_v32 = vld [vmem:[%s2512_s1 + $0x68] sm:$0xff]  ;;  %301 = vmatpush.msra.mxu2 %v1814_v29 }
   0x3   :  { %156 = vmatpush.msra.mxu1 %v1819_v30  ;;  %v1836_v33 = vld [vmem:[%s2512_s1 + $0x50] sm:$0xff]  ;;  %v1841_v34 = vld [vmem:[%s2512_s1 + $0x58] sm:$0xff]  ;;  %324 = vmatpush.msra.mxu3 %v1819_v30  ;;  %v1850_v35 = vld [vmem:[%s2512_s1 + $0x40] sm:$0xff] }
   0x4   :  { %vm57_vm0 = vcmp.ge.s32.totalorder %v56_v1, 64  ;;  %vm58_vm1 = vcmp.lt.s32.totalorder %v56_v1, 96  ;;  %134 = vmatpush.msra.mxu0 %v1824_v31  ;;  %v1855_v36 = vld [vmem:[%s2512_s1 + $0x48] sm:$0xff]  ;;  %302 = vmatpush.msra.mxu2 %v1824_v31  ;;  %v1864_v37 = vld [vmem:[%s2512_s1 + $0x30] sm:$0xff]  ;;  %v1869_v38 = vld [vmem:[%s2512_s1 + $0x38] sm:$0xff] }
   0x5   :  { %vm1775_vm2 = vmand %vm57_vm0, %vm58_vm1  ;;  %157 = vmatpush.msra.mxu1 %v1831_v32  ;;  %325 = vmatpush.msra.mxu3 %v1831_v32  ;;  %v1878_v39 = vld [vmem:[%s2512_s1 + $0x20] sm:$0xff]  ;;  %v1883_v40 = vld [vmem:[%s2512_s1 + $0x28] sm:$0xff] }
   0x6   :  { %v1781_v6 = vsel %vm1775_vm2, 1.0, %v1706_v5  ;;  %135 = vmatpush.msra.mxu0 %v1836_v33  ;;  %303 = vmatpush.msra.mxu2 %v1836_v33  ;;  %v1892_v41 = vld [vmem:[%s2512_s1 + $0x10] sm:$0xff]  ;;  %v1897_v42 = vld [vmem:[%s2512_s1 + $0x18] sm:$0xff]  ;;  %v1916_v47 = vld [vmem:[%s2512_s1] sm:$0xff] }
   0x7   :  { %v63_v7 = vmul.f32 %v61_v2, %v1781_v6  ;;  %v64_v8 = vmul.f32 %v62_v3, %v1781_v6  ;;  %158 = vmatpush.msra.mxu1 %v1841_v34  ;;  %326 = vmatpush.msra.mxu3 %v1841_v34  ;;  %v1921_v48 = vld [vmem:[%s2512_s1 + $0x8] sm:$0xff]  ;;  %v1984_v53 = vld [vmem:[%s2513_s2] ss:$0 sm:$0xff]  ;;  %v1513_v54 = vld [vmem:[%s2511_s0 + $0x10] sm:$0xff] }
   0x8   :  { %136 = vmatpush.msra.mxu0 %v1850_v35  ;;  %304 = vmatpush.msra.mxu2 %v1850_v35  ;;  %v1514_v61 = vld [vmem:[%s2511_s0 + $0x18] sm:$0xff] }
   0x9   :  { %1577 = vtanh.f32 %v63_v7  ;;  %159 = vmatpush.msra.mxu1 %v1855_v36  ;;  %327 = vmatpush.msra.mxu3 %v1855_v36 }
   0xa   :  { %1579 = vtanh.f32 %v64_v8  ;;  %137 = vmatpush.msra.mxu0 %v1864_v37  ;;  %305 = vmatpush.msra.mxu2 %v1864_v37 }
   0xb   :  { %160 = vmatpush.msra.mxu1 %v1869_v38  ;;  %328 = vmatpush.msra.mxu3 %v1869_v38 }
   0xc   :  { %138 = vmatpush.msra.mxu0 %v1878_v39  ;;  %306 = vmatpush.msra.mxu2 %v1878_v39 }
   0xd   :  { %161 = vmatpush.msra.mxu1 %v1883_v40  ;;  %329 = vmatpush.msra.mxu3 %v1883_v40 }
   0xe   :  { %139 = vmatpush.msra.mxu0 %v1892_v41  ;;  %307 = vmatpush.msra.mxu2 %v1892_v41 }
   0xf   :  { %v1578_v9 = vpop.eup %1577  ;;  %162 = vmatpush.msra.mxu1 %v1897_v42  ;;  %330 = vmatpush.msra.mxu3 %v1897_v42 }
  0x10   :  { %v1580_v10 = vpop.eup %1579  ;;  %v67_v11 = vmul.f32 0.5, %v1578_v9  ;;  %140 = vmatpush.msra.mxu0 %v1916_v47  ;;  %308 = vmatpush.msra.mxu2 %v1916_v47 }
  0x11   :  { %v68_v13 = vmul.f32 0.5, %v1580_v10  ;;  %163 = vmatpush.msra.mxu1 %v1921_v48  ;;  %331 = vmatpush.msra.mxu3 %v1921_v48 }
  0x12   :  { %v69_v12 = vadd.f32 0.5, %v67_v11  ;;  %466 = vmatpush.msrb.mxu0 %v1814_v29  ;;  %631 = vmatpush.msrb.mxu2 %v1814_v29 }
  0x13   :  { %v70_v15 = vadd.f32 0.5, %v68_v13  ;;  %489 = vmatpush.msrb.mxu1 %v1819_v30  ;;  %654 = vmatpush.msrb.mxu3 %v1819_v30 }
  0x14   :  { %v1787_v14 = vsel %vm1775_vm2, %v1578_v9, %v69_v12  ;;  %467 = vmatpush.msrb.mxu0 %v1824_v31  ;;  %632 = vmatpush.msrb.mxu2 %v1824_v31 }
  0x15   :  { %77 = vrot.lane.b32.xlu0 %v1787_v14, %s1707_s21  ;;  %v1793_v16 = vsel %vm1775_vm2, %v1580_v10, %v70_v15  ;;  %v73_v21 = vmul.f32 0.0, %v1787_v14  ;;  %490 = vmatpush.msrb.mxu1 %v1831_v32 }
  0x16   :  { %v74_v24 = vmul.f32 0.0, %v1793_v16  ;;  %655 = vmatpush.msrb.mxu3 %v1831_v32  ;;  %468 = vmatpush.msrb.mxu0 %v1836_v33 }
  0x17   :  { %491 = vmatpush.msrb.mxu1 %v1841_v34  ;;  %633 = vmatpush.msrb.mxu2 %v1836_v33 }
  0x18   :  { %656 = vmatpush.msrb.mxu3 %v1841_v34  ;;  %469 = vmatpush.msrb.mxu0 %v1850_v35 }
  0x19   :  { %492 = vmatpush.msrb.mxu1 %v1855_v36  ;;  %634 = vmatpush.msrb.mxu2 %v1850_v35 }
  0x1a   :  { %657 = vmatpush.msrb.mxu3 %v1855_v36  ;;  %470 = vmatpush.msrb.mxu0 %v1864_v37 }
  0x1b   :  { %493 = vmatpush.msrb.mxu1 %v1869_v38  ;;  %635 = vmatpush.msrb.mxu2 %v1864_v37 }
  0x1c   :  { %658 = vmatpush.msrb.mxu3 %v1869_v38  ;;  %471 = vmatpush.msrb.mxu0 %v1878_v39 }
  0x1d   :  { %79 = vrot.lane.b32.xlu0 %v1793_v16, %s1707_s21  ;;  %494 = vmatpush.msrb.mxu1 %v1883_v40 }
  0x1e   :  { %636 = vmatpush.msrb.mxu2 %v1878_v39  ;;  %659 = vmatpush.msrb.mxu3 %v1883_v40 }
  0x1f   :  { %472 = vmatpush.msrb.mxu0 %v1892_v41  ;;  %495 = vmatpush.msrb.mxu1 %v1897_v42 }
  0x20   :  { %637 = vmatpush.msrb.mxu2 %v1892_v41  ;;  %660 = vmatpush.msrb.mxu3 %v1897_v42 }
  0x21   :  { %473 = vmatpush.msrb.mxu0 %v1916_v47  ;;  %496 = vmatpush.msrb.mxu1 %v1921_v48 }
  0x22   :  { %638 = vmatpush.msrb.mxu2 %v1916_v47  ;;  %661 = vmatpush.msrb.mxu3 %v1921_v48 }
  0x87   :  { %v78_v17 = vpop.permute.xlu0 %77 }
  0x88   :  { %v83_v18 = vmul.f32 %v78_v17, %v1787_v14 }
  0x8a   :  { %87 = vrot.lane.b32.xlu1 %v83_v18, %s1708_s22 }
  0x8f   :  { %v80_v19 = vpop.permute.xlu0 %79 }
  0x90   :  { %v84_v20 = vmul.f32 %v80_v19, %v1793_v16 }
  0x92   :  { %89 = vrot.lane.b32.xlu1 %v84_v20, %s1708_s22 }
  0xfc   :  { %v88_v22 = vpop.permute.xlu1 %87 }
  0xfd   :  { %v1802_v23 = vadd.f32 %v88_v22, %v73_v21 }
  0xff   :  { %1581 = vtanh.f32 %v1802_v23 }
 0x104   :  { %v90_v25 = vpop.permute.xlu1 %89 }
 0x105   :  { %v1582_v26 = vpop.eup %1581  ;;  %v1806_v27 = vadd.f32 %v90_v25, %v74_v24 }
 0x106   :  { %99 = vrot.lane.b32.xlu2 %v1582_v26, %s1707_s21 }
 0x107   :  { %1583 = vtanh.f32 %v1806_v27 }
 0x10d   :  { %v1584_v28 = vpop.eup %1583 }
 0x10e   :  { %101 = vrot.lane.b32.xlu2 %v1584_v28, %s1707_s21 }
 0x160   :  { %v100_v43 = vpop.permute.xlu2 %99 }
 0x161   :  { %v105_v44 = vmul.f32 %v100_v43, %v1787_v14 }
 0x163   :  { %109 = vrot.lane.b32.xlu0 %v105_v44, %s1708_s22 }
 0x168   :  { %v102_v45 = vpop.permute.xlu2 %101 }
 0x169   :  { %v106_v46 = vmul.f32 %v102_v45, %v1793_v16 }
 0x16b   :  { %111 = vrot.lane.b32.xlu1 %v106_v46, %s1708_s22 }
 0x1d5   :  { %v110_v49 = vpop.permute.xlu0 %109 }
 0x1d6   :  { %v116_v50 = vsel %vm115_vm3, %v110_v49, 0.0 }
 0x1d7   :  { %1509 = vmatmul.msk.f32.vlgmr.msra.gmra.mxu0 %vm118_vm4, %v116_v50  ;;  %1511 = vmatmul.msk.f32.vlgmr.msra.gmra.mxu1 %vm118_vm4, %v116_v50 }
 0x1d8   :  { %796 = vmatpush.msra.mxu0 %v1814_v29  ;;  %819 = vmatpush.msra.mxu1 %v1819_v30 }
 0x1da   :  { %797 = vmatpush.msra.mxu0 %v1824_v31  ;;  %820 = vmatpush.msra.mxu1 %v1831_v32 }
 0x1dc   :  { %798 = vmatpush.msra.mxu0 %v1836_v33  ;;  %821 = vmatpush.msra.mxu1 %v1841_v34 }
 0x1dd   :  { %v112_v51 = vpop.permute.xlu1 %111 }
 0x1de   :  { %v117_v52 = vsel %vm115_vm3, %v112_v51, 0.0  ;;  %799 = vmatpush.msra.mxu0 %v1850_v35  ;;  %822 = vmatpush.msra.mxu1 %v1855_v36 }
 0x1df   :  { %1510 = vmatmul.msk.f32.gmra.mxu0 %vm118_vm4, %v117_v52  ;;  %1512 = vmatmul.msk.f32.gmra.mxu1 %vm118_vm4, %v117_v52 }
 0x1e0   :  { %800 = vmatpush.msra.mxu0 %v1864_v37  ;;  %823 = vmatpush.msra.mxu1 %v1869_v38 }
 0x1e2   :  { %801 = vmatpush.msra.mxu0 %v1878_v39  ;;  %824 = vmatpush.msra.mxu1 %v1883_v40 }
 0x1e4   :  { %802 = vmatpush.msra.mxu0 %v1892_v41  ;;  %825 = vmatpush.msra.mxu1 %v1897_v42 }
 0x1e6   :  { %803 = vmatpush.msra.mxu0 %v1916_v47  ;;  %826 = vmatpush.msra.mxu1 %v1921_v48 }
 0x254   :  { %v142_v55 = vpop.f32.mrf.mxu0  ;;  %v165_v56 = vpop.f32.mrf.mxu1 }
 0x255   :  { %v174_v57 = vadd.f32 %v1513_v54, %v142_v55  ;;  %v179_v58 = vadd.f32 %v1984_v53, %v165_v56 }
 0x257   :  { %v181_v59 = vmul.f32 %v174_v57, %v1781_v6  ;;  %v225_v60 = vmul.f32 %v179_v58, %v1781_v6 }
 0x259   :  { %1585 = vtanh.f32 %v181_v59 }
 0x25a   :  { %1587 = vtanh.f32 %v225_v60 }
 0x25c   :  { %v145_v62 = vpop.f32.mrf.mxu0  ;;  %v168_v63 = vpop.f32.mrf.mxu1 }
 0x25d   :  { %v175_v0 = vadd.f32 %v1514_v61, %v145_v62  ;;  %v180_v1 = vadd.f32 %v1984_v53, %v168_v63 }
 0x25f   :  { %v1586_v2 = vpop.eup %1585  ;;  %v182_v3 = vmul.f32 %v175_v0, %v1781_v6  ;;  %v226_v5 = vmul.f32 %v180_v1, %v1781_v6 }
 0x260   :  { %v1588_v7 = vpop.eup %1587  ;;  %v185_v8 = vmul.f32 0.5, %v1586_v2 }
 0x261   :  { %1589 = vtanh.f32 %v182_v3  ;;  %v229_v9 = vmul.f32 0.5, %v1588_v7 }
 0x262   :  { %1591 = vtanh.f32 %v226_v5  ;;  %v187_v10 = vadd.f32 0.5, %v185_v8 }
 0x263   :  { %v231_v11 = vadd.f32 0.5, %v229_v9 }
 0x264   :  { %v189_v12 = vsel %vm1775_vm2, %v1586_v2, %v187_v10 }
 0x265   :  { %v233_v13 = vsel %vm1775_vm2, %v1588_v7, %v231_v11  ;;  %195 = vrot.lane.b32.xlu2 %v189_v12, %s1707_s21  ;;  %v191_v46 = vmul.f32 %v189_v12, %v1802_v23 }
 0x266   :  { %239 = vrot.lane.b32.xlu0 %v233_v13, %s1707_s21 }
 0x267   :  { %v1590_v14 = vpop.eup %1589 }
 0x268   :  { %v1592_v15 = vpop.eup %1591  ;;  %v186_v16 = vmul.f32 0.5, %v1590_v14 }
 0x269   :  { %v230_v17 = vmul.f32 0.5, %v1592_v15 }
 0x26a   :  { %v188_v18 = vadd.f32 0.5, %v186_v16 }
 0x26b   :  { %v232_v19 = vadd.f32 0.5, %v230_v17 }
 0x26c   :  { %v190_v20 = vsel %vm1775_vm2, %v1590_v14, %v188_v18 }
 0x26d   :  { %v234_v21 = vsel %vm1775_vm2, %v1592_v15, %v232_v19  ;;  %197 = vrot.lane.b32.xlu1 %v190_v20, %s1707_s21  ;;  %v192_v51 = vmul.f32 %v190_v20, %v1806_v27  ;;  %v235_v27 = vmul.f32 0.0, %v233_v13  ;;  %v1519_v15 = vld [vmem:[%s2511_s0 + $0x20] sm:$0xff] }
 0x26e   :  { %241 = vrot.lane.b32.xlu2 %v234_v21, %s1707_s21  ;;  %v236_v52 = vmul.f32 0.0, %v234_v21 }
 0x2bf   :  { %v196_v22 = vpop.permute.xlu2 %195 }
 0x2c0   :  { %v201_v24 = vmul.f32 %v196_v22, %v189_v12  ;;  %v1520_v22 = vld [vmem:[%s2511_s0 + $0x28] sm:$0xff] }
 0x2c2   :  { %205 = vrot.lane.b32.xlu0 %v201_v24, %s1708_s22 }
 0x2c8   :  { %v242_v25 = vpop.permute.xlu2 %241 }
 0x2c9   :  { %v246_v26 = vmul.f32 %v242_v25, %v234_v21 }
 0x2cb   :  { %251 = vrot.lane.b32.xlu0 %v246_v26, %s1708_s22 }
 0x2d8   :  { %v240_v28 = vpop.permute.xlu0 %239 }
 0x2d9   :  { %v245_v43 = vmul.f32 %v240_v28, %v233_v13 }
 0x2db   :  { %249 = vrot.lane.b32.xlu1 %v245_v43, %s1708_s22 }
 0x2df   :  { %v198_v44 = vpop.permute.xlu1 %197 }
 0x2e0   :  { %v202_v45 = vmul.f32 %v198_v44, %v190_v20 }
 0x2e2   :  { %207 = vrot.lane.b32.xlu2 %v202_v45, %s1708_s22 }
 0x334   :  { %v206_v49 = vpop.permute.xlu0 %205 }
 0x335   :  { %v2015_v50 = vadd.f32 %v206_v49, %v191_v46 }
 0x337   :  { %1593 = vtanh.f32 %v2015_v50 }
 0x33c   :  { %v208_v54 = vpop.permute.xlu2 %207 }
 0x33d   :  { %v1594_v55 = vpop.eup %1593  ;;  %v252_v56 = vpop.permute.xlu0 %251  ;;  %v2019_v57 = vadd.f32 %v208_v54, %v192_v51 }
 0x33e   :  { %v2021_v58 = vadd.f32 %v252_v56, %v236_v52  ;;  %217 = vrot.lane.b32.xlu1 %v1594_v55, %s1707_s21 }
 0x33f   :  { %1595 = vtanh.f32 %v2019_v57 }
 0x340   :  { %1597 = vtanh.f32 %v2021_v58 }
 0x345   :  { %v1596_v23 = vpop.eup %1595 }
 0x346   :  { %v1598_v59 = vpop.eup %1597  ;;  %219 = vrot.lane.b32.xlu0 %v1596_v23, %s1707_s21 }
 0x347   :  { %263 = vrot.lane.b32.xlu1 %v1598_v59, %s1707_s21 }
 0x34d   :  { %v250_v60 = vpop.permute.xlu1 %249 }
 0x34e   :  { %v2028_v61 = vadd.f32 %v250_v60, %v235_v27 }
 0x350   :  { %1599 = vtanh.f32 %v2028_v61 }
 0x356   :  { %v1600_v62 = vpop.eup %1599 }
 0x357   :  { %261 = vrot.lane.b32.xlu2 %v1600_v62, %s1707_s21 }
 0x3b0   :  { %v218_v63 = vpop.permute.xlu1 %217 }
 0x3b1   :  { %v223_v0 = vmul.f32 %v218_v63, %v189_v12  ;;  %v262_v1 = vpop.permute.xlu2 %261 }
 0x3b2   :  { %v267_v2 = vmul.f32 %v262_v1, %v233_v13 }
 0x3b3   :  { %271 = vrot.lane.b32.xlu2 %v223_v0, %s1708_s22 }
 0x3b4   :  { %279 = vrot.lane.b32.xlu0 %v267_v2, %s1707_s21 }
 0x3b8   :  { %v220_v3 = vpop.permute.xlu0 %219 }
 0x3b9   :  { %v264_v5 = vpop.permute.xlu1 %263  ;;  %v224_v7 = vmul.f32 %v220_v3, %v190_v20 }
 0x3ba   :  { %v268_v8 = vmul.f32 %v264_v5, %v234_v21 }
 0x3bb   :  { %273 = vrot.lane.b32.xlu1 %v224_v7, %s1708_s22 }
 0x3bc   :  { %281 = vrot.lane.b32.xlu2 %v268_v8, %s1707_s21 }
 0x40d   :  { %v272_v9 = vpop.permute.xlu2 %271 }
 0x416   :  { %v282_v12 = vpop.permute.xlu2 %281 }
 0x426   :  { %v280_v10 = vpop.permute.xlu0 %279 }
 0x427   :  { %v285_v11 = vsel %vm115_vm3, %v272_v9, %v280_v10 }
 0x428   :  { %1515 = vmatmul.msk.f32.vlgmr.msra.gmra.mxu2 %vm118_vm4, %v285_v11  ;;  %1517 = vmatmul.msk.f32.vlgmr.msra.gmra.mxu3 %vm118_vm4, %v285_v11 }
 0x429   :  { %961 = vmatpush.msra.mxu2 %v1814_v29  ;;  %984 = vmatpush.msra.mxu3 %v1819_v30 }
 0x42b   :  { %962 = vmatpush.msra.mxu2 %v1824_v31  ;;  %985 = vmatpush.msra.mxu3 %v1831_v32 }
 0x42d   :  { %v274_v13 = vpop.permute.xlu1 %273  ;;  %963 = vmatpush.msra.mxu2 %v1836_v33  ;;  %986 = vmatpush.msra.mxu3 %v1841_v34 }
 0x42e   :  { %v286_v14 = vsel %vm115_vm3, %v274_v13, %v282_v12 }
 0x42f   :  { %964 = vmatpush.msra.mxu2 %v1850_v35  ;;  %987 = vmatpush.msra.mxu3 %v1855_v36 }
 0x430   :  { %1516 = vmatmul.msk.f32.gmra.mxu2 %vm118_vm4, %v286_v14  ;;  %1518 = vmatmul.msk.f32.gmra.mxu3 %vm118_vm4, %v286_v14 }
 0x431   :  { %965 = vmatpush.msra.mxu2 %v1864_v37  ;;  %988 = vmatpush.msra.mxu3 %v1869_v38 }
 0x433   :  { %966 = vmatpush.msra.mxu2 %v1878_v39  ;;  %989 = vmatpush.msra.mxu3 %v1883_v40 }
 0x435   :  { %967 = vmatpush.msra.mxu2 %v1892_v41  ;;  %990 = vmatpush.msra.mxu3 %v1897_v42 }
 0x437   :  { %968 = vmatpush.msra.mxu2 %v1916_v47  ;;  %991 = vmatpush.msra.mxu3 %v1921_v48 }
 0x4ab   :  { %v310_v16 = vpop.f32.mrf.mxu2  ;;  %v333_v17 = vpop.f32.mrf.mxu3 }
 0x4ac   :  { %v342_v18 = vadd.f32 %v1519_v15, %v310_v16  ;;  %v344_v19 = vadd.f32 %v1984_v53, %v333_v17 }
 0x4ae   :  { %v346_v20 = vmul.f32 %v342_v18, %v1781_v6  ;;  %v390_v21 = vmul.f32 %v344_v19, %v1781_v6 }
 0x4b0   :  { %1601 = vtanh.f32 %v346_v20 }
 0x4b1   :  { %1603 = vtanh.f32 %v390_v21 }
 0x4b3   :  { %v313_v24 = vpop.f32.mrf.mxu2  ;;  %v336_v25 = vpop.f32.mrf.mxu3 }
 0x4b4   :  { %v343_v26 = vadd.f32 %v1520_v22, %v313_v24  ;;  %v345_v28 = vadd.f32 %v1984_v53, %v336_v25 }
 0x4b6   :  { %v1602_v43 = vpop.eup %1601  ;;  %v347_v44 = vmul.f32 %v343_v26, %v1781_v6  ;;  %v391_v45 = vmul.f32 %v345_v28, %v1781_v6 }
 0x4b7   :  { %v1604_v46 = vpop.eup %1603  ;;  %v350_v49 = vmul.f32 0.5, %v1602_v43 }
 0x4b8   :  { %1605 = vtanh.f32 %v347_v44  ;;  %v394_v51 = vmul.f32 0.5, %v1604_v46 }
 0x4b9   :  { %1607 = vtanh.f32 %v391_v45  ;;  %v352_v52 = vadd.f32 0.5, %v350_v49 }
 0x4ba   :  { %v396_v54 = vadd.f32 0.5, %v394_v51 }
 0x4bb   :  { %v354_v55 = vsel %vm1775_vm2, %v1602_v43, %v352_v52 }
 0x4bc   :  { %v398_v56 = vsel %vm1775_vm2, %v1604_v46, %v396_v54  ;;  %360 = vrot.lane.b32.xlu0 %v354_v55, %s1707_s21 }
 0x4bd   :  { %404 = vrot.lane.b32.xlu1 %v398_v56, %s1707_s21  ;;  %v400_v12 = vmul.f32 %v398_v56, %v2028_v61  ;;  %v356_v61 = vmul.f32 %v354_v55, %v2015_v50 }
 0x4be   :  { %v1606_v23 = vpop.eup %1605 }
 0x4bf   :  { %v1608_v59 = vpop.eup %1607  ;;  %v351_v27 = vmul.f32 0.5, %v1606_v23 }
 0x4c0   :  { %v395_v60 = vmul.f32 0.5, %v1608_v59 }
 0x4c1   :  { %v353_v62 = vadd.f32 0.5, %v351_v27 }
 0x4c2   :  { %v397_v63 = vadd.f32 0.5, %v395_v60 }
 0x4c3   :  { %v355_v0 = vsel %vm1775_vm2, %v1606_v23, %v353_v62 }
 0x4c4   :  { %v399_v1 = vsel %vm1775_vm2, %v1608_v59, %v397_v63  ;;  %362 = vrot.lane.b32.xlu2 %v355_v0, %s1707_s21  ;;  %v357_v15 = vmul.f32 %v355_v0, %v2019_v57  ;;  %v1525_v59 = vld [vmem:[%s2511_s0 + $0x30] sm:$0xff] }
 0x4c5   :  { %406 = vrot.lane.b32.xlu0 %v399_v1, %s1707_s21  ;;  %v401_v57 = vmul.f32 %v399_v1, %v2021_v58 }
 0x51e   :  { %v363_v2 = vpop.permute.xlu2 %362 }
 0x51f   :  { %v367_v3 = vmul.f32 %v363_v2, %v355_v0  ;;  %v1526_v2 = vld [vmem:[%s2511_s0 + $0x38] sm:$0xff] }
 0x521   :  { %372 = vrot.lane.b32.xlu0 %v367_v3, %s1708_s22 }
 0x52e   :  { %v361_v5 = vpop.permute.xlu0 %360 }
 0x52f   :  { %v405_v7 = vpop.permute.xlu1 %404  ;;  %v366_v8 = vmul.f32 %v361_v5, %v354_v55 }
 0x530   :  { %v410_v9 = vmul.f32 %v405_v7, %v398_v56 }
 0x531   :  { %370 = vrot.lane.b32.xlu1 %v366_v8, %s1708_s22 }
 0x532   :  { %414 = vrot.lane.b32.xlu2 %v410_v9, %s1708_s22 }
 0x537   :  { %v407_v10 = vpop.permute.xlu0 %406 }
 0x538   :  { %v411_v11 = vmul.f32 %v407_v10, %v399_v1 }
 0x53a   :  { %416 = vrot.lane.b32.xlu1 %v411_v11, %s1708_s22 }
 0x58c   :  { %v415_v13 = vpop.permute.xlu2 %414 }
 0x58d   :  { %v2087_v14 = vadd.f32 %v415_v13, %v400_v12 }
 0x58f   :  { %1609 = vtanh.f32 %v2087_v14 }
 0x593   :  { %v373_v16 = vpop.permute.xlu0 %372 }
 0x594   :  { %v2091_v17 = vadd.f32 %v373_v16, %v357_v15 }
 0x595   :  { %v1610_v18 = vpop.eup %1609 }
 0x596   :  { %1611 = vtanh.f32 %v2091_v17  ;;  %426 = vrot.lane.b32.xlu0 %v1610_v18, %s1707_s21 }
 0x59c   :  { %v1612_v19 = vpop.eup %1611 }
 0x59d   :  { %384 = vrot.lane.b32.xlu1 %v1612_v19, %s1707_s21 }
 0x5a3   :  { %v371_v20 = vpop.permute.xlu1 %370 }
 0x5a4   :  { %v2097_v21 = vadd.f32 %v371_v20, %v356_v61 }
 0x5a6   :  { %1613 = vtanh.f32 %v2097_v21 }
 0x5ac   :  { %v1614_v22 = vpop.eup %1613  ;;  %v417_v24 = vpop.permute.xlu1 %416 }
 0x5ad   :  { %v2101_v25 = vadd.f32 %v417_v24, %v401_v57  ;;  %382 = vrot.lane.b32.xlu2 %v1614_v22, %s1707_s21 }
 0x5af   :  { %1615 = vtanh.f32 %v2101_v25 }
 0x5b5   :  { %v1616_v26 = vpop.eup %1615 }
 0x5b6   :  { %428 = vrot.lane.b32.xlu2 %v1616_v26, %s1707_s21 }
 0x607   :  { %v383_v28 = vpop.permute.xlu2 %382 }
 0x608   :  { %v427_v50 = vpop.permute.xlu0 %426  ;;  %v388_v43 = vmul.f32 %v383_v28, %v354_v55 }
 0x609   :  { %v432_v44 = vmul.f32 %v427_v50, %v398_v56 }
 0x60a   :  { %436 = vrot.lane.b32.xlu0 %v388_v43, %s1708_s22 }
 0x60b   :  { %444 = vrot.lane.b32.xlu1 %v432_v44, %s1707_s21 }
 0x60f   :  { %v385_v58 = vpop.permute.xlu1 %384 }
 0x610   :  { %v429_v45 = vpop.permute.xlu2 %428  ;;  %v389_v46 = vmul.f32 %v385_v58, %v355_v0 }
 0x611   :  { %v433_v49 = vmul.f32 %v429_v45, %v399_v1 }
 0x612   :  { %438 = vrot.lane.b32.xlu2 %v389_v46, %s1708_s22 }
 0x613   :  { %446 = vrot.lane.b32.xlu0 %v433_v49, %s1707_s21 }
 0x66c   :  { %v439_v55 = vpop.permute.xlu2 %438 }
 0x67c   :  { %v437_v51 = vpop.permute.xlu0 %436 }
 0x67d   :  { %v445_v52 = vpop.permute.xlu1 %444 }
 0x67e   :  { %v450_v54 = vsel %vm115_vm3, %v437_v51, %v445_v52 }
 0x67f   :  { %1521 = vmatmul.msk.f32.vlgmr.msrb.gmra.mxu0 %vm118_vm4, %v450_v54  ;;  %1523 = vmatmul.msk.f32.vlgmr.msrb.gmra.mxu1 %vm118_vm4, %v450_v54 }
 0x680   :  { %1126 = vmatpush.msrb.mxu0 %v1814_v29  ;;  %1149 = vmatpush.msrb.mxu1 %v1819_v30 }
 0x682   :  { %1127 = vmatpush.msrb.mxu0 %v1824_v31  ;;  %1150 = vmatpush.msrb.mxu1 %v1831_v32 }
 0x684   :  { %1128 = vmatpush.msrb.mxu0 %v1836_v33  ;;  %1151 = vmatpush.msrb.mxu1 %v1841_v34 }
 0x685   :  { %v447_v56 = vpop.permute.xlu0 %446 }
 0x686   :  { %v451_v23 = vsel %vm115_vm3, %v439_v55, %v447_v56  ;;  %1129 = vmatpush.msrb.mxu0 %v1850_v35  ;;  %1152 = vmatpush.msrb.mxu1 %v1855_v36 }
 0x687   :  { %1522 = vmatmul.msk.f32.gmra.mxu0 %vm118_vm4, %v451_v23  ;;  %1524 = vmatmul.msk.f32.gmra.mxu1 %vm118_vm4, %v451_v23 }
 0x688   :  { %1130 = vmatpush.msrb.mxu0 %v1864_v37  ;;  %1153 = vmatpush.msrb.mxu1 %v1869_v38 }
 0x68a   :  { %1131 = vmatpush.msrb.mxu0 %v1878_v39  ;;  %1154 = vmatpush.msrb.mxu1 %v1883_v40 }
 0x68c   :  { %1132 = vmatpush.msrb.mxu0 %v1892_v41  ;;  %1155 = vmatpush.msrb.mxu1 %v1897_v42 }
 0x68e   :  { %1133 = vmatpush.msrb.mxu0 %v1916_v47  ;;  %1156 = vmatpush.msrb.mxu1 %v1921_v48 }
 0x6fc   :  { %v475_v27 = vpop.f32.mrf.mxu0  ;;  %v498_v60 = vpop.f32.mrf.mxu1 }
 0x6fd   :  { %v507_v62 = vadd.f32 %v1525_v59, %v475_v27  ;;  %v509_v63 = vadd.f32 %v1984_v53, %v498_v60 }
 0x6ff   :  { %v511_v0 = vmul.f32 %v507_v62, %v1781_v6  ;;  %v555_v1 = vmul.f32 %v509_v63, %v1781_v6 }
 0x701   :  { %1617 = vtanh.f32 %v511_v0 }
 0x702   :  { %1619 = vtanh.f32 %v555_v1 }
 0x704   :  { %v478_v3 = vpop.f32.mrf.mxu0  ;;  %v501_v5 = vpop.f32.mrf.mxu1 }
 0x705   :  { %v508_v7 = vadd.f32 %v1526_v2, %v478_v3  ;;  %v510_v8 = vadd.f32 %v1984_v53, %v501_v5 }
 0x707   :  { %v1618_v9 = vpop.eup %1617  ;;  %v512_v10 = vmul.f32 %v508_v7, %v1781_v6  ;;  %v556_v11 = vmul.f32 %v510_v8, %v1781_v6 }
 0x708   :  { %v1620_v12 = vpop.eup %1619  ;;  %v515_v13 = vmul.f32 0.5, %v1618_v9 }
 0x709   :  { %1621 = vtanh.f32 %v512_v10  ;;  %v559_v15 = vmul.f32 0.5, %v1620_v12 }
 0x70a   :  { %1623 = vtanh.f32 %v556_v11  ;;  %v517_v16 = vadd.f32 0.5, %v515_v13 }
 0x70b   :  { %v561_v18 = vadd.f32 0.5, %v559_v15 }
 0x70c   :  { %v519_v19 = vsel %vm1775_vm2, %v1618_v9, %v517_v16 }
 0x70d   :  { %v563_v61 = vsel %vm1775_vm2, %v1620_v12, %v561_v18  ;;  %525 = vrot.lane.b32.xlu1 %v519_v19, %s1707_s21  ;;  %v521_v55 = vmul.f32 %v519_v19, %v2097_v21 }
 0x70e   :  { %569 = vrot.lane.b32.xlu2 %v563_v61, %s1707_s21  ;;  %v565_v23 = vmul.f32 %v563_v61, %v2087_v14 }
 0x70f   :  { %v1622_v20 = vpop.eup %1621 }
 0x710   :  { %v1624_v57 = vpop.eup %1623  ;;  %v516_v22 = vmul.f32 0.5, %v1622_v20 }
 0x711   :  { %v560_v24 = vmul.f32 0.5, %v1624_v57 }
 0x712   :  { %v518_v26 = vadd.f32 0.5, %v516_v22 }
 0x713   :  { %v562_v28 = vadd.f32 0.5, %v560_v24 }
 0x714   :  { %v520_v50 = vsel %vm1775_vm2, %v1622_v20, %v518_v26 }
 0x715   :  { %v564_v43 = vsel %vm1775_vm2, %v1624_v57, %v562_v28  ;;  %527 = vrot.lane.b32.xlu0 %v520_v50, %s1707_s21  ;;  %v522_v21 = vmul.f32 %v520_v50, %v2091_v17 }
 0x716   :  { %571 = vrot.lane.b32.xlu1 %v564_v43, %s1707_s21  ;;  %v566_v62 = vmul.f32 %v564_v43, %v2101_v25 }
 0x768   :  { %v570_v44 = vpop.permute.xlu2 %569 }
 0x769   :  { %v575_v58 = vmul.f32 %v570_v44, %v563_v61 }
 0x76b   :  { %579 = vrot.lane.b32.xlu0 %v575_v58, %s1708_s22 }
 0x77f   :  { %v526_v45 = vpop.permute.xlu1 %525 }
 0x780   :  { %v531_v46 = vmul.f32 %v526_v45, %v519_v19 }
 0x782   :  { %535 = vrot.lane.b32.xlu2 %v531_v46, %s1708_s22 }
 0x787   :  { %v528_v49 = vpop.permute.xlu0 %527 }
 0x788   :  { %v572_v51 = vpop.permute.xlu1 %571  ;;  %v532_v52 = vmul.f32 %v528_v49, %v520_v50 }
 0x789   :  { %v576_v54 = vmul.f32 %v572_v51, %v564_v43 }
 0x78a   :  { %537 = vrot.lane.b32.xlu1 %v532_v52, %s1708_s22 }
 0x78b   :  { %581 = vrot.lane.b32.xlu2 %v576_v54, %s1708_s22 }
 0x7dc   :  { %v536_v56 = vpop.permute.xlu2 %535 }
 0x7dd   :  { %v2162_v59 = vadd.f32 %v536_v56, %v521_v55  ;;  %v580_v27 = vpop.permute.xlu0 %579 }
 0x7de   :  { %v2164_v60 = vadd.f32 %v580_v27, %v565_v23 }
 0x7df   :  { %1625 = vtanh.f32 %v2162_v59 }
 0x7e0   :  { %1627 = vtanh.f32 %v2164_v60 }
 0x7e5   :  { %v1626_v63 = vpop.eup %1625  ;;  %v582_v0 = vpop.permute.xlu2 %581 }
 0x7e6   :  { %v1628_v1 = vpop.eup %1627  ;;  %v2169_v2 = vadd.f32 %v582_v0, %v566_v62  ;;  %547 = vrot.lane.b32.xlu0 %v1626_v63, %s1707_s21 }
 0x7e7   :  { %591 = vrot.lane.b32.xlu1 %v1628_v1, %s1707_s21 }
 0x7e8   :  { %1629 = vtanh.f32 %v2169_v2 }
 0x7ee   :  { %v1630_v14 = vpop.eup %1629 }
 0x7ef   :  { %593 = vrot.lane.b32.xlu0 %v1630_v14, %s1707_s21 }
 0x7fc   :  { %v538_v3 = vpop.permute.xlu1 %537 }
 0x7fd   :  { %v2176_v5 = vadd.f32 %v538_v3, %v522_v21 }
 0x7ff   :  { %1631 = vtanh.f32 %v2176_v5 }
 0x805   :  { %v1632_v25 = vpop.eup %1631 }
 0x806   :  { %549 = vrot.lane.b32.xlu2 %v1632_v25, %s1707_s21 }
 0x858   :  { %v548_v7 = vpop.permute.xlu0 %547 }
 0x859   :  { %v592_v8 = vpop.permute.xlu1 %591  ;;  %v553_v9 = vmul.f32 %v548_v7, %v519_v19 }
 0x85a   :  { %v597_v10 = vmul.f32 %v592_v8, %v563_v61 }
 0x85b   :  { %601 = vrot.lane.b32.xlu1 %v553_v9, %s1708_s22 }
 0x85c   :  { %609 = vrot.lane.b32.xlu2 %v597_v10, %s1707_s21 }
 0x860   :  { %v550_v11 = vpop.permute.xlu2 %549 }
 0x861   :  { %v594_v12 = vpop.permute.xlu0 %593  ;;  %v554_v13 = vmul.f32 %v550_v11, %v520_v50 }
 0x862   :  { %v598_v17 = vmul.f32 %v594_v12, %v564_v43 }
 0x863   :  { %603 = vrot.lane.b32.xlu0 %v554_v13, %s1708_s22 }
 0x864   :  { %611 = vrot.lane.b32.xlu1 %v598_v17, %s1707_s21 }
 0x8b6   :  { %v610_v15 = vpop.permute.xlu2 %609 }
 0x8cd   :  { %v602_v16 = vpop.permute.xlu1 %601 }
 0x8ce   :  { %v615_v18 = vsel %vm115_vm3, %v602_v16, %v610_v15 }
 0x8cf   :  { %1527 = vmatmul.msk.f32.vlgmr.msrb.gmra.mxu2 %vm118_vm4, %v615_v18  ;;  %1529 = vmatmul.msk.f32.vlgmr.msrb.gmra.mxu3 %vm118_vm4, %v615_v18 }
 0x8d0   :  { %1561 = vmatpush.msrb.mxu3 %v1814_v29  ;;  %1291 = vmatpush.msrb.mxu2 %v1819_v30  ;;  %v1531_v29 = vld [vmem:[%s2511_s0 + $0x40] sm:$0xff] }
 0x8d2   :  { %1562 = vmatpush.msrb.mxu3 %v1824_v31  ;;  %1292 = vmatpush.msrb.mxu2 %v1831_v32 }
 0x8d4   :  { %1563 = vmatpush.msrb.mxu3 %v1836_v33  ;;  %1293 = vmatpush.msrb.mxu2 %v1841_v34 }
 0x8d5   :  { %v604_v19 = vpop.permute.xlu0 %603 }
 0x8d6   :  { %v612_v61 = vpop.permute.xlu1 %611  ;;  %1564 = vmatpush.msrb.mxu3 %v1850_v35  ;;  %1294 = vmatpush.msrb.mxu2 %v1855_v36  ;;  %v1532_v36 = vld [vmem:[%s2511_s0 + $0x48] sm:$0xff] }
 0x8d7   :  { %v616_v20 = vsel %vm115_vm3, %v604_v19, %v612_v61 }
 0x8d8   :  { %1528 = vmatmul.msk.f32.gmra.mxu2 %vm118_vm4, %v616_v20  ;;  %1530 = vmatmul.msk.f32.gmra.mxu3 %vm118_vm4, %v616_v20 }
 0x8d9   :  { %1565 = vmatpush.msrb.mxu3 %v1864_v37  ;;  %1295 = vmatpush.msrb.mxu2 %v1869_v38 }
 0x8db   :  { %1566 = vmatpush.msrb.mxu3 %v1878_v39  ;;  %1296 = vmatpush.msrb.mxu2 %v1883_v40 }
 0x8dd   :  { %1567 = vmatpush.msrb.mxu3 %v1892_v41  ;;  %1297 = vmatpush.msrb.mxu2 %v1897_v42 }
 0x8df   :  { %1568 = vmatpush.msrb.mxu3 %v1916_v47  ;;  %1298 = vmatpush.msrb.mxu2 %v1921_v48 }
 0x952   :  { %v640_v30 = vpop.f32.mrf.mxu2  ;;  %v663_v31 = vpop.f32.mrf.mxu3 }
 0x953   :  { %v672_v32 = vadd.f32 %v1531_v29, %v640_v30  ;;  %v674_v33 = vadd.f32 %v1984_v53, %v663_v31 }
 0x955   :  { %v676_v34 = vmul.f32 %v672_v32, %v1781_v6  ;;  %v720_v35 = vmul.f32 %v674_v33, %v1781_v6 }
 0x957   :  { %1633 = vtanh.f32 %v676_v34 }
 0x958   :  { %1635 = vtanh.f32 %v720_v35 }
 0x95b   :  { %v643_v37 = vpop.f32.mrf.mxu2  ;;  %v666_v38 = vpop.f32.mrf.mxu3 }
 0x95c   :  { %v673_v39 = vadd.f32 %v1532_v36, %v643_v37  ;;  %v675_v40 = vadd.f32 %v1984_v53, %v666_v38  ;;  %v1537_v36 = vld [vmem:[%s2511_s0 + $0x50] sm:$0xff] }
 0x95d   :  { %v1634_v41 = vpop.eup %1633 }
 0x95e   :  { %v1636_v42 = vpop.eup %1635  ;;  %v677_v47 = vmul.f32 %v673_v39, %v1781_v6  ;;  %v721_v48 = vmul.f32 %v675_v40, %v1781_v6  ;;  %v680_v57 = vmul.f32 0.5, %v1634_v41 }
 0x95f   :  { %v724_v22 = vmul.f32 0.5, %v1636_v42 }
 0x960   :  { %1637 = vtanh.f32 %v677_v47  ;;  %v682_v24 = vadd.f32 0.5, %v680_v57  ;;  %v1538_v47 = vld [vmem:[%s2511_s0 + $0x58] sm:$0xff] }
 0x961   :  { %1639 = vtanh.f32 %v721_v48  ;;  %v726_v26 = vadd.f32 0.5, %v724_v22 }
 0x962   :  { %v684_v28 = vsel %vm1775_vm2, %v1634_v41, %v682_v24 }
 0x963   :  { %v728_v50 = vsel %vm1775_vm2, %v1636_v42, %v726_v26  ;;  %690 = vrot.lane.b32.xlu2 %v684_v28, %s1707_s21  ;;  %v686_v1 = vmul.f32 %v684_v28, %v2162_v59 }
 0x964   :  { %734 = vrot.lane.b32.xlu0 %v728_v50, %s1707_s21 }
 0x966   :  { %v1638_v43 = vpop.eup %1637 }
 0x967   :  { %v1640_v44 = vpop.eup %1639  ;;  %v681_v58 = vmul.f32 0.5, %v1638_v43 }
 0x968   :  { %v725_v45 = vmul.f32 0.5, %v1640_v44 }
 0x969   :  { %v683_v46 = vadd.f32 0.5, %v681_v58 }
 0x96a   :  { %v727_v49 = vadd.f32 0.5, %v725_v45 }
 0x96b   :  { %v685_v51 = vsel %vm1775_vm2, %v1638_v43, %v683_v46 }
 0x96c   :  { %v729_v52 = vsel %vm1775_vm2, %v1640_v44, %v727_v49  ;;  %692 = vrot.lane.b32.xlu1 %v685_v51, %s1707_s21  ;;  %v687_v3 = vmul.f32 %v685_v51, %v2176_v5 }
 0x96d   :  { %736 = vrot.lane.b32.xlu2 %v729_v52, %s1707_s21  ;;  %v731_v7 = vmul.f32 %v729_v52, %v2169_v2  ;;  %v730_v2 = vmul.f32 %v728_v50, %v2164_v60 }
 0x9bd   :  { %v691_v54 = vpop.permute.xlu2 %690 }
 0x9be   :  { %v696_v55 = vmul.f32 %v691_v54, %v684_v28 }
 0x9c0   :  { %700 = vrot.lane.b32.xlu0 %v696_v55, %s1708_s22 }
 0x9c7   :  { %v737_v56 = vpop.permute.xlu2 %736 }
 0x9c8   :  { %v741_v23 = vmul.f32 %v737_v56, %v729_v52 }
 0x9ca   :  { %746 = vrot.lane.b32.xlu0 %v741_v23, %s1708_s22 }
 0x9d6   :  { %v735_v27 = vpop.permute.xlu0 %734 }
 0x9d7   :  { %v740_v62 = vmul.f32 %v735_v27, %v728_v50 }
 0x9d9   :  { %744 = vrot.lane.b32.xlu1 %v740_v62, %s1708_s22 }
 0x9de   :  { %v693_v63 = vpop.permute.xlu1 %692 }
 0x9df   :  { %v697_v0 = vmul.f32 %v693_v63, %v685_v51 }
 0x9e1   :  { %702 = vrot.lane.b32.xlu2 %v697_v0, %s1708_s22 }
 0xa32   :  { %v701_v14 = vpop.permute.xlu0 %700 }
 0xa33   :  { %v2235_v21 = vadd.f32 %v701_v14, %v686_v1 }
 0xa35   :  { %1641 = vtanh.f32 %v2235_v21 }
 0xa3b   :  { %v1642_v25 = vpop.eup %1641  ;;  %v703_v8 = vpop.permute.xlu2 %702 }
 0xa3c   :  { %v747_v9 = vpop.permute.xlu0 %746  ;;  %v2240_v10 = vadd.f32 %v703_v8, %v687_v3  ;;  %712 = vrot.lane.b32.xlu1 %v1642_v25, %s1707_s21 }
 0xa3d   :  { %v2243_v11 = vadd.f32 %v747_v9, %v731_v7 }
 0xa3e   :  { %1643 = vtanh.f32 %v2240_v10 }
 0xa3f   :  { %1645 = vtanh.f32 %v2243_v11 }
 0xa44   :  { %v1644_v59 = vpop.eup %1643 }
 0xa45   :  { %v1646_v12 = vpop.eup %1645  ;;  %714 = vrot.lane.b32.xlu0 %v1644_v59, %s1707_s21 }
 0xa46   :  { %758 = vrot.lane.b32.xlu1 %v1646_v12, %s1707_s21 }
 0xa4b   :  { %v745_v5 = vpop.permute.xlu1 %744 }
 0xa4c   :  { %v2250_v13 = vadd.f32 %v745_v5, %v730_v2 }
 0xa4e   :  { %1647 = vtanh.f32 %v2250_v13 }
 0xa54   :  { %v1648_v17 = vpop.eup %1647 }
 0xa55   :  { %756 = vrot.lane.b32.xlu2 %v1648_v17, %s1707_s21 }
 0xaae   :  { %v713_v15 = vpop.permute.xlu1 %712 }
 0xaaf   :  { %v757_v16 = vpop.permute.xlu2 %756  ;;  %v718_v18 = vmul.f32 %v713_v15, %v684_v28 }
 0xab0   :  { %v762_v19 = vmul.f32 %v757_v16, %v728_v50 }
 0xab1   :  { %766 = vrot.lane.b32.xlu2 %v718_v18, %s1708_s22 }
 0xab2   :  { %774 = vrot.lane.b32.xlu0 %v762_v19, %s1707_s21 }
 0xab7   :  { %v715_v61 = vpop.permute.xlu0 %714 }
 0xab8   :  { %v759_v20 = vpop.permute.xlu1 %758  ;;  %v719_v29 = vmul.f32 %v715_v61, %v685_v51 }
 0xab9   :  { %v763_v60 = vmul.f32 %v759_v20, %v729_v52 }
 0xaba   :  { %768 = vrot.lane.b32.xlu1 %v719_v29, %s1708_s22 }
 0xabb   :  { %776 = vrot.lane.b32.xlu2 %v763_v60, %s1707_s21 }
 0xb0b   :  { %v767_v30 = vpop.permute.xlu2 %766 }
 0xb15   :  { %v777_v33 = vpop.permute.xlu2 %776 }
 0xb24   :  { %v775_v31 = vpop.permute.xlu0 %774 }
 0xb25   :  { %v780_v32 = vsel %vm115_vm3, %v767_v30, %v775_v31 }
 0xb26   :  { %1533 = vmatmul.msk.f32.vlgmr.msra.gmra.mxu0 %vm118_vm4, %v780_v32  ;;  %1535 = vmatmul.msk.f32.vlgmr.msra.gmra.mxu1 %vm118_vm4, %v780_v32 }
 0xb2c   :  { %v769_v34 = vpop.permute.xlu1 %768 }
 0xb2d   :  { %v781_v35 = vsel %vm115_vm3, %v769_v34, %v777_v33 }
 0xb2e   :  { %1534 = vmatmul.msk.f32.gmra.mxu0 %vm118_vm4, %v781_v35  ;;  %1536 = vmatmul.msk.f32.gmra.mxu1 %vm118_vm4, %v781_v35 }
 0xba3   :  { %v805_v37 = vpop.f32.mrf.mxu0  ;;  %v828_v38 = vpop.f32.mrf.mxu1 }
 0xba4   :  { %v837_v39 = vadd.f32 %v1537_v36, %v805_v37  ;;  %v839_v40 = vadd.f32 %v1984_v53, %v828_v38 }
 0xba6   :  { %v841_v41 = vmul.f32 %v837_v39, %v1781_v6  ;;  %v885_v42 = vmul.f32 %v839_v40, %v1781_v6 }
 0xba8   :  { %1649 = vtanh.f32 %v841_v41 }
 0xba9   :  { %1651 = vtanh.f32 %v885_v42  ;;  %v1543_v42 = vld [vmem:[%s2511_s0 + $0x60] sm:$0xff] }
 0xbab   :  { %v808_v48 = vpop.f32.mrf.mxu0  ;;  %v831_v57 = vpop.f32.mrf.mxu1 }
 0xbac   :  { %v838_v22 = vadd.f32 %v1538_v47, %v808_v48  ;;  %v840_v24 = vadd.f32 %v1984_v53, %v831_v57 }
 0xbae   :  { %v1650_v26 = vpop.eup %1649  ;;  %v842_v28 = vmul.f32 %v838_v22, %v1781_v6  ;;  %v886_v50 = vmul.f32 %v840_v24, %v1781_v6  ;;  %v2328_v22 = vld [vmem:[%s2513_s2] ss:$0 sm:$0xff] }
 0xbaf   :  { %v1652_v43 = vpop.eup %1651  ;;  %v845_v44 = vmul.f32 0.5, %v1650_v26 }
 0xbb0   :  { %1653 = vtanh.f32 %v842_v28  ;;  %v889_v58 = vmul.f32 0.5, %v1652_v43 }
 0xbb1   :  { %1655 = vtanh.f32 %v886_v50  ;;  %v847_v45 = vadd.f32 0.5, %v845_v44  ;;  %v1544_v50 = vld [vmem:[%s2511_s0 + $0x68] sm:$0xff] }
 0xbb2   :  { %v891_v46 = vadd.f32 0.5, %v889_v58 }
 0xbb3   :  { %v849_v49 = vsel %vm1775_vm2, %v1650_v26, %v847_v45 }
 0xbb4   :  { %v893_v51 = vsel %vm1775_vm2, %v1652_v43, %v891_v46  ;;  %855 = vrot.lane.b32.xlu0 %v849_v49, %s1707_s21 }
 0xbb5   :  { %899 = vrot.lane.b32.xlu1 %v893_v51, %s1707_s21  ;;  %v895_v9 = vmul.f32 %v893_v51, %v2250_v13  ;;  %v851_v13 = vmul.f32 %v849_v49, %v2235_v21 }
 0xbb6   :  { %v1654_v53 = vpop.eup %1653 }
 0xbb7   :  { %v1656_v52 = vpop.eup %1655  ;;  %v846_v54 = vmul.f32 0.5, %v1654_v53 }
 0xbb8   :  { %v890_v55 = vmul.f32 0.5, %v1656_v52 }
 0xbb9   :  { %v848_v56 = vadd.f32 0.5, %v846_v54 }
 0xbba   :  { %v892_v23 = vadd.f32 0.5, %v890_v55 }
 0xbbb   :  { %v850_v27 = vsel %vm1775_vm2, %v1654_v53, %v848_v56 }
 0xbbc   :  { %v894_v62 = vsel %vm1775_vm2, %v1656_v52, %v892_v23  ;;  %857 = vrot.lane.b32.xlu2 %v850_v27, %s1707_s21  ;;  %v852_v2 = vmul.f32 %v850_v27, %v2240_v10 }
 0xbbd   :  { %901 = vrot.lane.b32.xlu0 %v894_v62, %s1707_s21  ;;  %v896_v10 = vmul.f32 %v894_v62, %v2243_v11 }
 0xc16   :  { %v858_v63 = vpop.permute.xlu2 %857 }
 0xc17   :  { %v862_v0 = vmul.f32 %v858_v63, %v850_v27 }
 0xc19   :  { %867 = vrot.lane.b32.xlu0 %v862_v0, %s1708_s22 }
 0xc26   :  { %v856_v1 = vpop.permute.xlu0 %855 }
 0xc27   :  { %v900_v14 = vpop.permute.xlu1 %899  ;;  %v861_v3 = vmul.f32 %v856_v1, %v849_v49 }
 0xc28   :  { %v905_v25 = vmul.f32 %v900_v14, %v893_v51 }
 0xc29   :  { %865 = vrot.lane.b32.xlu1 %v861_v3, %s1708_s22 }
 0xc2a   :  { %909 = vrot.lane.b32.xlu2 %v905_v25, %s1708_s22 }
 0xc2f   :  { %v902_v7 = vpop.permute.xlu0 %901 }
 0xc30   :  { %v906_v8 = vmul.f32 %v902_v7, %v894_v62 }
 0xc32   :  { %911 = vrot.lane.b32.xlu1 %v906_v8, %s1708_s22 }
 0xc84   :  { %v910_v59 = vpop.permute.xlu2 %909 }
 0xc85   :  { %v2293_v12 = vadd.f32 %v910_v59, %v895_v9 }
 0xc87   :  { %1657 = vtanh.f32 %v2293_v12 }
 0xc8b   :  { %v868_v5 = vpop.permute.xlu0 %867 }
 0xc8c   :  { %v2297_v17 = vadd.f32 %v868_v5, %v852_v2 }
 0xc8d   :  { %v1658_v15 = vpop.eup %1657 }
 0xc8e   :  { %1659 = vtanh.f32 %v2297_v17  ;;  %921 = vrot.lane.b32.xlu0 %v1658_v15, %s1707_s21 }
 0xc94   :  { %v1660_v16 = vpop.eup %1659 }
 0xc95   :  { %879 = vrot.lane.b32.xlu1 %v1660_v16, %s1707_s21 }
 0xc9b   :  { %v866_v18 = vpop.permute.xlu1 %865 }
 0xc9c   :  { %v2303_v19 = vadd.f32 %v866_v18, %v851_v13 }
 0xc9e   :  { %1661 = vtanh.f32 %v2303_v19 }
 0xca4   :  { %v1662_v61 = vpop.eup %1661  ;;  %v912_v20 = vpop.permute.xlu1 %911 }
 0xca5   :  { %v2307_v29 = vadd.f32 %v912_v20, %v896_v10  ;;  %877 = vrot.lane.b32.xlu2 %v1662_v61, %s1707_s21 }
 0xca7   :  { %1663 = vtanh.f32 %v2307_v29 }
 0xcad   :  { %v1664_v60 = vpop.eup %1663 }
 0xcae   :  { %923 = vrot.lane.b32.xlu2 %v1664_v60, %s1707_s21 }
 0xcff   :  { %v878_v30 = vpop.permute.xlu2 %877 }
 0xd00   :  { %v922_v21 = vpop.permute.xlu0 %921  ;;  %v883_v31 = vmul.f32 %v878_v30, %v849_v49 }
 0xd01   :  { %v927_v32 = vmul.f32 %v922_v21, %v893_v51 }
 0xd02   :  { %931 = vrot.lane.b32.xlu0 %v883_v31, %s1708_s22 }
 0xd03   :  { %939 = vrot.lane.b32.xlu1 %v927_v32, %s1707_s21 }
 0xd07   :  { %v880_v11 = vpop.permute.xlu1 %879 }
 0xd08   :  { %v924_v33 = vpop.permute.xlu2 %923  ;;  %v884_v34 = vmul.f32 %v880_v11, %v850_v27 }
 0xd09   :  { %v928_v35 = vmul.f32 %v924_v33, %v894_v62 }
 0xd0a   :  { %933 = vrot.lane.b32.xlu2 %v884_v34, %s1708_s22 }
 0xd0b   :  { %941 = vrot.lane.b32.xlu0 %v928_v35, %s1707_s21 }
 0xd64   :  { %v934_v39 = vpop.permute.xlu2 %933 }
 0xd74   :  { %v932_v36 = vpop.permute.xlu0 %931 }
 0xd75   :  { %v940_v37 = vpop.permute.xlu1 %939 }
 0xd76   :  { %v945_v38 = vsel %vm115_vm3, %v932_v36, %v940_v37 }
 0xd77   :  { %1539 = vmatmul.msk.f32.vlgmr.msra.gmra.mxu2 %vm118_vm4, %v945_v38  ;;  %1541 = vmatmul.msk.f32.vlgmr.msra.gmra.mxu3 %vm118_vm4, %v945_v38 }
 0xd7d   :  { %v942_v40 = vpop.permute.xlu0 %941 }
 0xd7e   :  { %v946_v41 = vsel %vm115_vm3, %v934_v39, %v942_v40 }
 0xd7f   :  { %1540 = vmatmul.msk.f32.gmra.mxu2 %vm118_vm4, %v946_v41  ;;  %1542 = vmatmul.msk.f32.gmra.mxu3 %vm118_vm4, %v946_v41 }
 0xdfa   :  { %v970_v47 = vpop.f32.mrf.mxu2  ;;  %v993_v48 = vpop.f32.mrf.mxu3 }
 0xdfb   :  { %v1002_v57 = vadd.f32 %v1543_v42, %v970_v47  ;;  %v1004_v24 = vadd.f32 %v2328_v22, %v993_v48 }
 0xdfd   :  { %v1006_v26 = vmul.f32 %v1002_v57, %v1781_v6  ;;  %v1050_v28 = vmul.f32 %v1004_v24, %v1781_v6 }
 0xdff   :  { %1665 = vtanh.f32 %v1006_v26 }
 0xe00   :  { %1667 = vtanh.f32 %v1050_v28 }
 0xe02   :  { %v973_v43 = vpop.f32.mrf.mxu2  ;;  %v996_v44 = vpop.f32.mrf.mxu3 }
 0xe03   :  { %v1003_v58 = vadd.f32 %v1544_v50, %v973_v43  ;;  %v1005_v45 = vadd.f32 %v2328_v22, %v996_v44  ;;  %v1549_v50 = vld [vmem:[%s2511_s0 + $0x70] sm:$0xff] }
 0xe05   :  { %v1666_v46 = vpop.eup %1665  ;;  %v1007_v49 = vmul.f32 %v1003_v58, %v1781_v6  ;;  %v1051_v51 = vmul.f32 %v1005_v45, %v1781_v6 }
 0xe06   :  { %v1668_v53 = vpop.eup %1667  ;;  %v1010_v52 = vmul.f32 0.5, %v1666_v46 }
 0xe07   :  { %1669 = vtanh.f32 %v1007_v49  ;;  %v1054_v54 = vmul.f32 0.5, %v1668_v53 }
 0xe08   :  { %1671 = vtanh.f32 %v1051_v51  ;;  %v1012_v55 = vadd.f32 0.5, %v1010_v52 }
 0xe09   :  { %v1056_v56 = vadd.f32 0.5, %v1054_v54 }
 0xe0a   :  { %v1014_v23 = vsel %vm1775_vm2, %v1666_v46, %v1012_v55 }
 0xe0b   :  { %v1058_v27 = vsel %vm1775_vm2, %v1668_v53, %v1056_v56  ;;  %1020 = vrot.lane.b32.xlu1 %v1014_v23, %s1707_s21  ;;  %v1016_v18 = vmul.f32 %v1014_v23, %v2303_v19 }
 0xe0c   :  { %1064 = vrot.lane.b32.xlu2 %v1058_v27, %s1707_s21  ;;  %v1060_v61 = vmul.f32 %v1058_v27, %v2293_v12 }
 0xe0d   :  { %v1670_v62 = vpop.eup %1669 }
 0xe0e   :  { %v1672_v63 = vpop.eup %1671  ;;  %v1011_v0 = vmul.f32 0.5, %v1670_v62 }
 0xe0f   :  { %v1055_v1 = vmul.f32 0.5, %v1672_v63 }
 0xe10   :  { %v1013_v14 = vadd.f32 0.5, %v1011_v0 }
 0xe11   :  { %v1057_v3 = vadd.f32 0.5, %v1055_v1 }
 0xe12   :  { %v1015_v25 = vsel %vm1775_vm2, %v1670_v62, %v1013_v14 }
 0xe13   :  { %v1059_v7 = vsel %vm1775_vm2, %v1672_v63, %v1057_v3  ;;  %1022 = vrot.lane.b32.xlu0 %v1015_v25, %s1707_s21  ;;  %v1017_v19 = vmul.f32 %v1015_v25, %v2297_v17 }
 0xe14   :  { %1066 = vrot.lane.b32.xlu1 %v1059_v7, %s1707_s21  ;;  %v1061_v21 = vmul.f32 %v1059_v7, %v2307_v29 }
 0xe66   :  { %v1065_v8 = vpop.permute.xlu2 %1064 }
 0xe67   :  { %v1070_v9 = vmul.f32 %v1065_v8, %v1058_v27 }
 0xe69   :  { %1074 = vrot.lane.b32.xlu0 %v1070_v9, %s1708_s22 }
 0xe7d   :  { %v1021_v59 = vpop.permute.xlu1 %1020 }
 0xe7e   :  { %v1026_v2 = vmul.f32 %v1021_v59, %v1014_v23 }
 0xe80   :  { %1030 = vrot.lane.b32.xlu2 %v1026_v2, %s1708_s22 }
 0xe85   :  { %v1023_v5 = vpop.permute.xlu0 %1022 }
 0xe86   :  { %v1067_v15 = vpop.permute.xlu1 %1066  ;;  %v1027_v16 = vmul.f32 %v1023_v5, %v1015_v25 }
 0xe87   :  { %v1071_v13 = vmul.f32 %v1067_v15, %v1059_v7 }
 0xe88   :  { %1032 = vrot.lane.b32.xlu1 %v1027_v16, %s1708_s22 }
 0xe89   :  { %1076 = vrot.lane.b32.xlu2 %v1071_v13, %s1708_s22 }
 0xeda   :  { %v1031_v10 = vpop.permute.xlu2 %1030 }
 0xedb   :  { %v2357_v20 = vadd.f32 %v1031_v10, %v1016_v18  ;;  %v1075_v60 = vpop.permute.xlu0 %1074 }
 0xedc   :  { %v2359_v30 = vadd.f32 %v1075_v60, %v1060_v61 }
 0xedd   :  { %1673 = vtanh.f32 %v2357_v20 }
 0xede   :  { %1675 = vtanh.f32 %v2359_v30 }
 0xee3   :  { %v1674_v31 = vpop.eup %1673  ;;  %v1077_v32 = vpop.permute.xlu2 %1076 }
 0xee4   :  { %v1676_v11 = vpop.eup %1675  ;;  %v2364_v33 = vadd.f32 %v1077_v32, %v1061_v21  ;;  %1042 = vrot.lane.b32.xlu0 %v1674_v31, %s1707_s21 }
 0xee5   :  { %1086 = vrot.lane.b32.xlu1 %v1676_v11, %s1707_s21 }
 0xee6   :  { %1677 = vtanh.f32 %v2364_v33 }
 0xeec   :  { %v1678_v12 = vpop.eup %1677 }
 0xeed   :  { %1088 = vrot.lane.b32.xlu0 %v1678_v12, %s1707_s21 }
 0xefa   :  { %v1033_v34 = vpop.permute.xlu1 %1032 }
 0xefb   :  { %v2371_v35 = vadd.f32 %v1033_v34, %v1017_v19 }
 0xefd   :  { %1679 = vtanh.f32 %v2371_v35 }
 0xf03   :  { %v1680_v29 = vpop.eup %1679 }
 0xf04   :  { %1044 = vrot.lane.b32.xlu2 %v1680_v29, %s1707_s21 }
 0xf56   :  { %v1043_v36 = vpop.permute.xlu0 %1042 }
 0xf57   :  { %v1087_v37 = vpop.permute.xlu1 %1086  ;;  %v1048_v38 = vmul.f32 %v1043_v36, %v1014_v23  ;;  %v1550_v23 = vld [vmem:[%s2511_s0 + $0x78] sm:$0xff] }
 0xf58   :  { %v1092_v39 = vmul.f32 %v1087_v37, %v1058_v27 }
 0xf59   :  { %1096 = vrot.lane.b32.xlu1 %v1048_v38, %s1708_s22 }
 0xf5a   :  { %1104 = vrot.lane.b32.xlu2 %v1092_v39, %s1707_s21 }
 0xf5e   :  { %v1045_v40 = vpop.permute.xlu2 %1044 }
 0xf5f   :  { %v1089_v41 = vpop.permute.xlu0 %1088  ;;  %v1049_v42 = vmul.f32 %v1045_v40, %v1015_v25 }
 0xf60   :  { %v1093_v17 = vmul.f32 %v1089_v41, %v1059_v7 }
 0xf61   :  { %1098 = vrot.lane.b32.xlu0 %v1049_v42, %s1708_s22 }
 0xf62   :  { %1106 = vrot.lane.b32.xlu1 %v1093_v17, %s1707_s21 }
 0xfb4   :  { %v1105_v47 = vpop.permute.xlu2 %1104 }
 0xfcb   :  { %v1097_v48 = vpop.permute.xlu1 %1096 }
 0xfcc   :  { %v1110_v57 = vsel %vm115_vm3, %v1097_v48, %v1105_v47 }
 0xfcd   :  { %1545 = vmatmul.msk.f32.vlgmr.msrb.gmra.mxu0 %vm118_vm4, %v1110_v57  ;;  %1547 = vmatmul.msk.f32.vlgmr.msrb.gmra.mxu1 %vm118_vm4, %v1110_v57 }
 0xfd3   :  { %v1099_v24 = vpop.permute.xlu0 %1098 }
 0xfd4   :  { %v1107_v26 = vpop.permute.xlu1 %1106 }
 0xfd5   :  { %v1111_v28 = vsel %vm115_vm3, %v1099_v24, %v1107_v26 }
 0xfd6   :  { %1546 = vmatmul.msk.f32.vlgmr.msrb.gmra.mxu3 %vm118_vm4, %v1111_v28  ;;  %1548 = vmatmul.msk.f32.gmra.mxu1 %vm118_vm4, %v1111_v28 }
0x104a   :  { %v1135_v43 = vpop.f32.mrf.mxu0  ;;  %v1158_v44 = vpop.f32.mrf.mxu1 }
0x104b   :  { %v1167_v58 = vadd.f32 %v1549_v50, %v1135_v43  ;;  %v1169_v45 = vadd.f32 %v2328_v22, %v1158_v44 }
0x104d   :  { %v1171_v46 = vmul.f32 %v1167_v58, %v1781_v6  ;;  %v1215_v49 = vmul.f32 %v1169_v45, %v1781_v6 }
0x104f   :  { %1681 = vtanh.f32 %v1171_v46 }
0x1050   :  { %1683 = vtanh.f32 %v1215_v49 }
0x1053   :  { %v1161_v51 = vpop.f32.mrf.mxu1 }
0x1054   :  { %v1170_v53 = vadd.f32 %v2328_v22, %v1161_v51 }
0x1055   :  { %v1682_v52 = vpop.eup %1681 }
0x1056   :  { %v1684_v54 = vpop.eup %1683  ;;  %v1216_v55 = vmul.f32 %v1170_v53, %v1781_v6  ;;  %v1175_v56 = vmul.f32 0.5, %v1682_v52 }
0x1057   :  { %v1219_v27 = vmul.f32 0.5, %v1684_v54 }
0x1058   :  { %1685 = vtanh.f32 %v1216_v55  ;;  %v1177_v62 = vadd.f32 0.5, %v1175_v56 }
0x1059   :  { %v1138_v63 = vpop.f32.mrf.mxu3  ;;  %v1221_v0 = vadd.f32 0.5, %v1219_v27 }
0x105a   :  { %v1168_v1 = vadd.f32 %v1550_v23, %v1138_v63  ;;  %v1179_v14 = vsel %vm1775_vm2, %v1682_v52, %v1177_v62 }
0x105b   :  { %v1223_v3 = vsel %vm1775_vm2, %v1684_v54, %v1221_v0  ;;  %1185 = vrot.lane.b32.xlu2 %v1179_v14, %s1707_s21  ;;  %v1181_v11 = vmul.f32 %v1179_v14, %v2357_v20 }
0x105c   :  { %v1172_v25 = vmul.f32 %v1168_v1, %v1781_v6  ;;  %1229 = vrot.lane.b32.xlu0 %v1223_v3, %s1707_s21  ;;  %v1225_v42 = vmul.f32 %v1223_v3, %v2359_v30 }
0x105e   :  { %v1686_v7 = vpop.eup %1685  ;;  %1687 = vtanh.f32 %v1172_v25 }
0x105f   :  { %v1220_v8 = vmul.f32 0.5, %v1686_v7 }
0x1061   :  { %v1222_v9 = vadd.f32 0.5, %v1220_v8 }
0x1063   :  { %v1224_v59 = vsel %vm1775_vm2, %v1686_v7, %v1222_v9 }
0x1064   :  { %v1688_v2 = vpop.eup %1687  ;;  %1231 = vrot.lane.b32.xlu2 %v1224_v59, %s1707_s21  ;;  %v1226_v34 = vmul.f32 %v1224_v59, %v2364_v33 }
0x1065   :  { %v1176_v5 = vmul.f32 0.5, %v1688_v2 }
0x1067   :  { %v1178_v15 = vadd.f32 0.5, %v1176_v5 }
0x1069   :  { %v1180_v16 = vsel %vm1775_vm2, %v1688_v2, %v1178_v15 }
0x106a   :  { %1187 = vrot.lane.b32.xlu1 %v1180_v16, %s1707_s21  ;;  %v1182_v38 = vmul.f32 %v1180_v16, %v2371_v35 }
0x10b5   :  { %v1186_v13 = vpop.permute.xlu2 %1185 }
0x10b6   :  { %v1191_v18 = vmul.f32 %v1186_v13, %v1179_v14  ;;  %v1353_v13 = vld [vmem:[%s2514_s3 + $0x18] sm:$0xff] }
0x10b7   :  { %1380 = vmatpush.msra.mxu3 %v1353_v13 }
0x10b8   :  { %1195 = vrot.lane.b32.xlu0 %v1191_v18, %s1708_s22  ;;  %v1352_v18 = vld [vmem:[%s2514_s3 + $0x10] sm:$0xff] }
0x10b9   :  { %1381 = vmatpush.msra.mxu3 %v1352_v18 }
0x10be   :  { %v1232_v10 = vpop.permute.xlu2 %1231 }
0x10bf   :  { %v1236_v61 = vmul.f32 %v1232_v10, %v1224_v59  ;;  %v1351_v10 = vld [vmem:[%s2514_s3 + $0x8] sm:$0xff] }
0x10c0   :  { %1382 = vmatpush.msra.mxu3 %v1351_v10 }
0x10c1   :  { %1241 = vrot.lane.b32.xlu0 %v1236_v61, %s1708_s22  ;;  %v1350_v61 = vld [vmem:[%s2514_s3] sm:$0xff] }
0x10c2   :  { %1383 = vmatpush.msra.mxu3 %v1350_v61 }
0x10ce   :  { %v1230_v60 = vpop.permute.xlu0 %1229 }
0x10cf   :  { %v1235_v21 = vmul.f32 %v1230_v60, %v1223_v3 }
0x10d1   :  { %1239 = vrot.lane.b32.xlu1 %v1235_v21, %s1708_s22 }
0x10dc   :  { %v1188_v31 = vpop.permute.xlu1 %1187 }
0x10dd   :  { %v1192_v32 = vmul.f32 %v1188_v31, %v1180_v16 }
0x10df   :  { %1197 = vrot.lane.b32.xlu2 %v1192_v32, %s1708_s22 }
0x112a   :  { %v1196_v12 = vpop.permute.xlu0 %1195 }
0x112b   :  { %v1201_v19 = vadd.f32 %v1196_v12, %v1181_v11 }
0x112d   :  { %1689 = vtanh.f32 %v1201_v19  ;;  %v1394_v19 = vld [vmem:[%s2517_s5 + $0x8] sm:$0xff] }
0x112e   :  { %1420 = vmatpush.msra.mxu0 %v1394_v19 }
0x1133   :  { %v1690_v29 = vpop.eup %1689  ;;  %v1242_v36 = vpop.permute.xlu0 %1241 }
0x1134   :  { %v2415_v37 = vadd.f32 %v1242_v36, %v1226_v34  ;;  %1207 = vrot.lane.b32.xlu1 %v1690_v29, %s1707_s21  ;;  %v1393_v34 = vld [vmem:[%s2517_s5] sm:$0xff]  ;;  %v1430_v29 = vld [vmem:[%s2518_s7 + $0x8] sm:$0xff] }
0x1135   :  { %1421 = vmatpush.msra.mxu0 %v1393_v34  ;;  %1455 = vmatpush.msra.mxu1 %v1430_v29  ;;  %v1573_v36 = vld [vmem:[%s2515_s4] ss:$0 sm:$0xff] }
0x1136   :  { %1691 = vtanh.f32 %v2415_v37 }
0x1139   :  { %v1198_v39 = vpop.permute.xlu2 %1197 }
0x113a   :  { %v1202_v40 = vadd.f32 %v1198_v39, %v1182_v38 }
0x113c   :  { %v1692_v41 = vpop.eup %1691  ;;  %1693 = vtanh.f32 %v1202_v40 }
0x113d   :  { %1253 = vrot.lane.b32.xlu1 %v1692_v41, %s1707_s21 }
0x1142   :  { %v1694_v20 = vpop.eup %1693 }
0x1143   :  { %v1240_v33 = vpop.permute.xlu1 %1239  ;;  %1209 = vrot.lane.b32.xlu0 %v1694_v20, %s1707_s21 }
0x1144   :  { %v1245_v17 = vadd.f32 %v1240_v33, %v1225_v42  ;;  %v1429_v42 = vld [vmem:[%s2518_s7] sm:$0xff]  ;;  %v1469_v33 = vld [vmem:[%s2520_s9 + $0x18] sm:$0xff] }
0x1145   :  { %1456 = vmatpush.msra.mxu1 %v1429_v42  ;;  %1492 = vmatpush.msra.mxu2 %v1469_v33 }
0x1146   :  { %1695 = vtanh.f32 %v1245_v17 }
0x114c   :  { %v1696_v47 = vpop.eup %1695 }
0x114d   :  { %1251 = vrot.lane.b32.xlu2 %v1696_v47, %s1707_s21  ;;  %v1574_v47 = vld [vmem:[%s2516_s6] ss:$0 sm:$0xff] }
0x11a6   :  { %v1208_v48 = vpop.permute.xlu1 %1207 }
0x11a7   :  { %v1252_v57 = vpop.permute.xlu2 %1251  ;;  %v1213_v35 = vmul.f32 %v1208_v48, %v1179_v14 }
0x11a8   :  { %v1257_v24 = vmul.f32 %v1252_v57, %v1223_v3 }
0x11a9   :  { %1261 = vrot.lane.b32.xlu2 %v1213_v35, %s1708_s22 }
0x11aa   :  { %1269 = vrot.lane.b32.xlu0 %v1257_v24, %s1707_s21 }
0x11af   :  { %v1254_v26 = vpop.permute.xlu1 %1253 }
0x11b0   :  { %v1258_v28 = vmul.f32 %v1254_v26, %v1224_v59  ;;  %v1467_v26 = vld [vmem:[%s2520_s9 + $0x8] sm:$0xff] }
0x11b2   :  { %1271 = vrot.lane.b32.xlu2 %v1258_v28, %s1707_s21  ;;  %v1466_v28 = vld [vmem:[%s2520_s9] sm:$0xff] }
0x11b5   :  { %v1210_v30 = vpop.permute.xlu0 %1209 }
0x11b6   :  { %v1214_v50 = vmul.f32 %v1210_v30, %v1180_v16  ;;  %v1575_v30 = vld [vmem:[%s2519_s8] ss:$0 sm:$0xff] }
0x11b8   :  { %1263 = vrot.lane.b32.xlu1 %v1214_v50, %s1708_s22 }
0x1203   :  { %v1262_v43 = vpop.permute.xlu2 %1261 }
0x120c   :  { %v1272_v45 = vpop.permute.xlu2 %1271 }
0x121c   :  { %v1270_v44 = vpop.permute.xlu0 %1269 }
0x121d   :  { %v1275_v58 = vsel %vm115_vm3, %v1262_v43, %v1270_v44 }
0x121e   :  { %1551 = vmatmul.msk.f32.vlgmr.msrb.gmra.mxu2 %vm118_vm4, %v1275_v58 }
0x122a   :  { %v1264_v46 = vpop.permute.xlu1 %1263 }
0x122b   :  { %v1276_v49 = vsel %vm115_vm3, %v1264_v46, %v1272_v45 }
0x122c   :  { %1552 = vmatmul.msk.f32.gmra.mxu2 %vm118_vm4, %v1276_v49  ;;  %v1576_v49 = vld [vmem:[%s2521_s10] ss:$0 sm:$0xff] }
0x12a1   :  { %v1300_v51 = vpop.f32.mrf.mxu2 }
0x12a2   :  { %v1301_v53 = vadd.f32 %v2328_v22, %v1300_v51 }
0x12a4   :  { %v1306_v52 = vmul.f32 %v1301_v53, %v1781_v6 }
0x12a6   :  { %1697 = vtanh.f32 %v1306_v52 }
0x12ac   :  { %v1698_v54 = vpop.eup %1697 }
0x12ad   :  { %v1310_v55 = vmul.f32 0.5, %v1698_v54 }
0x12af   :  { %v1303_v56 = vpop.f32.mrf.mxu2  ;;  %v1312_v23 = vadd.f32 0.5, %v1310_v55 }
0x12b0   :  { %v1304_v27 = vadd.f32 %v2328_v22, %v1303_v56 }
0x12b1   :  { %v1314_v62 = vsel %vm1775_vm2, %v1698_v54, %v1312_v23 }
0x12b2   :  { %v1307_v63 = vmul.f32 %v1304_v27, %v1781_v6  ;;  %1320 = vrot.lane.b32.xlu0 %v1314_v62, %s1707_s21  ;;  %v1316_v6 = vmul.f32 %v1314_v62, %v1245_v17  ;;  %v1468_v17 = vld [vmem:[%s2520_s9 + $0x10] sm:$0xff] }
0x12b3   :  { %1493 = vmatpush.msra.mxu2 %v1468_v17 }
0x12b4   :  { %1699 = vtanh.f32 %v1307_v63 }
0x12b5   :  { %1494 = vmatpush.msra.mxu2 %v1467_v26 }
0x12b7   :  { %1495 = vmatpush.msra.mxu2 %v1466_v28 }
0x12ba   :  { %v1700_v0 = vpop.eup %1699 }
0x12bb   :  { %v1311_v1 = vmul.f32 0.5, %v1700_v0 }
0x12bd   :  { %v1313_v14 = vadd.f32 0.5, %v1311_v1 }
0x12bf   :  { %v1315_v3 = vsel %vm1775_vm2, %v1700_v0, %v1313_v14 }
0x12c0   :  { %1322 = vrot.lane.b32.xlu1 %v1315_v3, %s1707_s21  ;;  %v1317_v4 = vmul.f32 %v1315_v3, %v2415_v37 }
0x1324   :  { %v1321_v25 = vpop.permute.xlu0 %1320 }
0x1325   :  { %v1326_v7 = vmul.f32 %v1321_v25, %v1314_v62 }
0x1327   :  { %1330 = vrot.lane.b32.xlu2 %v1326_v7, %s1708_s22 }
0x1332   :  { %v1323_v22 = vpop.permute.xlu1 %1322 }
0x1333   :  { %v1327_v8 = vmul.f32 %v1323_v22, %v1315_v3 }
0x1335   :  { %1332 = vrot.lane.b32.xlu0 %v1327_v8, %s1708_s22 }
0x1381   :  { %v1331_v9 = vpop.permute.xlu2 %1330 }
0x1382   :  { %v1336_v59 = vadd.f32 %v1331_v9, %v1316_v6 }
0x1384   :  { %1701 = vtanh.f32 %v1336_v59 }
0x138a   :  { %v1702_v2 = vpop.eup %1701 }
0x138b   :  { %1342 = vrot.lane.b32.xlu1 %v1702_v2, %s1707_s21 }
0x13a7   :  { %v1333_v5 = vpop.permute.xlu0 %1332 }
0x13a8   :  { %v1337_v15 = vadd.f32 %v1333_v5, %v1317_v4 }
0x13aa   :  { %1703 = vtanh.f32 %v1337_v15 }
0x13b0   :  { %v1704_v16 = vpop.eup %1703 }
0x13b1   :  { %1344 = vrot.lane.b32.xlu2 %v1704_v16, %s1707_s21 }
0x13fd   :  { %v1343_v60 = vpop.permute.xlu1 %1342 }
0x13fe   :  { %v1348_v21 = vmul.f32 %v1343_v60, %v1314_v62 }
0x1400   :  { %1360 = vrot.lane.b32.xlu0 %v1348_v21, %s1708_s22 }
0x140b   :  { %v1345_v31 = vpop.permute.xlu2 %1344 }
0x140c   :  { %v1349_v32 = vmul.f32 %v1345_v31, %v1315_v3 }
0x140e   :  { %1362 = vrot.lane.b32.xlu1 %v1349_v32, %s1708_s22 }
0x1472   :  { %v1361_v11 = vpop.permute.xlu0 %1360 }
0x1473   :  { %1553 = vmatmul.msk.f32.vlgmr.msra.gmra.mxu3 %vm115_vm3, %v1361_v11 }
0x1480   :  { %v1363_v12 = vpop.permute.xlu1 %1362 }
0x1481   :  { %1554 = vmatmul.msk.f32.gmra.mxu3 %vm115_vm3, %v1363_v12 }
0x14f6   :  { %v1385_v37 = vpop.f32.mrf.mxu3 }
0x14f7   :  { %v1386_v38 = vadd.f32 %v1573_v36, %v1385_v37 }
0x14f9   :  { %v1391_v39 = vmax.f32 %v1386_v38, 0.0 }
0x14fb   :  { %1555 = vmatmul.msk.f32.vlgmr.msra.gmra.mxu0 %vm1399_vm5, %v1391_v39 }
0x1504   :  { %v1388_v40 = vpop.f32.mrf.mxu3 }
0x1505   :  { %v1389_v41 = vadd.f32 %v1573_v36, %v1388_v40 }
0x1507   :  { %v1392_v20 = vmax.f32 %v1389_v41, 0.0 }
0x1509   :  { %1556 = vmatmul.msk.f32.gmra.mxu0 %vm1399_vm5, %v1392_v20 }
0x1578   :  { %v1423_v48 = vpop.f32.mrf.mxu0 }
0x1579   :  { %v1424_v57 = vadd.f32 %v1574_v47, %v1423_v48 }
0x157b   :  { %1557 = vmatmul.msk.f32.vlgmr.msra.gmra.mxu1 %vm1399_vm5, %v1424_v57 }
0x1586   :  { %v1426_v35 = vpop.f32.mrf.mxu0 }
0x1587   :  { %v1427_v24 = vadd.f32 %v1574_v47, %v1426_v35 }
0x1589   :  { %1558 = vmatmul.msk.f32.gmra.mxu1 %vm1399_vm5, %v1427_v24 }
0x15f8   :  { %v1458_v50 = vpop.f32.mrf.mxu1 }
0x15f9   :  { %v1459_v43 = vadd.f32 %v1575_v30, %v1458_v50 }
0x15fb   :  { %v1464_v44 = vmax.f32 %v1459_v43, 0.0 }
0x15fd   :  { %1559 = vmatmul.msk.f32.vlgmr.msra.gmra.mxu2 %vm115_vm3, %v1464_v44 }
0x1606   :  { %v1461_v58 = vpop.f32.mrf.mxu1 }
0x1607   :  { %v1462_v45 = vadd.f32 %v1575_v30, %v1461_v58 }
0x1609   :  { %v1465_v46 = vmax.f32 %v1462_v45, 0.0 }
0x160b   :  { %1560 = vmatmul.msk.f32.gmra.mxu2 %vm115_vm3, %v1465_v46 }
0x1680   :  { %v1497_v51 = vpop.f32.mrf.mxu2 }
0x1681   :  { %v1498_v53 = vadd.f32 %v1576_v49, %v1497_v51 }
0x1683   :  { %1503 = vst [vmem:[%s2522_s11] sm:$0xff] %v1498_v53 }
0x168e   :  { %v1500_v52 = vpop.f32.mrf.mxu2 }
0x168f   :  { %v1501_v54 = vadd.f32 %v1576_v49, %v1500_v52 }
0x1691   :  { %1504 = vst [vmem:[%s2522_s11 + $0x8] sm:$0xff] %v1501_v54 }

</bundles_post_ra>
